<compile_context>
chip_gen: v5e
topology: v5e:2x2
jax: 0.10.0
libtpu: 0.0.40
codegen_flags: <defaults>
</compile_context>

<pallas_src>
import math
import functools

import jax
import jax.numpy as jnp
from jax import lax
from jax.experimental import pallas as pl
from jax.experimental.pallas import tpu as pltpu


def _layer_norm(v, gamma, beta, eps=1e-6):
    mu = jnp.mean(v, axis=-1, keepdims=True)
    var = jnp.mean((v - mu) * (v - mu), axis=-1, keepdims=True)
    return (v - mu) * lax.rsqrt(var + eps) * gamma + beta


def _encoder_layer_kernel(num_heads, d_k,
                          valid_ref,                       # scalar prefetch (SMEM)
                          x_ref,
                          ln1g_ref, ln1b_ref,
                          wqkv_ref, bqkv_ref,
                          wo_ref, bo_ref,
                          ln2g_ref, ln2b_ref,
                          w1_ref, b1_ref, w2_ref, b2_ref,
                          out_ref):
    b = pl.program_id(0)
    vlen = valid_ref[b]                                    # number of valid keys

    x = x_ref[0]                                           # (S, D) f32
    S, D = x.shape
    H = num_heads

    # ---- pre-attention layer norm (f32) ----
    x_norm = _layer_norm(x, ln1g_ref[...], ln1b_ref[...])

    # ---- fused QKV projection: one MXU matmul, f32 accumulate ----
    qkv = jnp.dot(x_norm, wqkv_ref[...],
                  preferred_element_type=jnp.float32) + bqkv_ref[...]   # (S, 3D)
    q = qkv[:, :D]
    k = qkv[:, D:2 * D]
    v = qkv[:, 2 * D:]

    # heads on a leading (non-lane) axis: (H, S, d_k)
    qh = jnp.transpose(q.reshape(S, H, d_k), (1, 0, 2))
    kh = jnp.transpose(k.reshape(S, H, d_k), (1, 0, 2))
    vh = jnp.transpose(v.reshape(S, H, d_k), (1, 0, 2))

    # ---- batched scaled dot-product attention (all heads at once) ----
    scale = jnp.float32(1.0 / math.sqrt(d_k))
    scores = jnp.einsum('hqd,hkd->hqk', qh, kh,
                        preferred_element_type=jnp.float32) * scale     # (H, S, S)

    # key-padding mask rebuilt in-kernel from the prefetched valid length
    col = lax.broadcasted_iota(jnp.int32, (S, S), 1)
    keep = col < vlen                                                   # (S, S)
    scores = jnp.where(keep[None, :, :], scores, jnp.float32(-1e30))

    m = jnp.max(scores, axis=-1, keepdims=True)
    p = jnp.exp(scores - m)
    denom = jnp.sum(p, axis=-1, keepdims=True)
    attn = p / denom                                                    # softmax
    # attention dropout is identity at inference

    ctx = jnp.einsum('hqk,hkd->hqd', attn, vh,
                     preferred_element_type=jnp.float32)                # (H, S, d_k)
    context = jnp.transpose(ctx, (1, 0, 2)).reshape(S, D)               # (S, D)

    attn_out = jnp.dot(context, wo_ref[...],
                       preferred_element_type=jnp.float32) + bo_ref[...]

    # residual 1 (dropout is identity)
    attn_out = attn_out + x

    # ---- position-wise feed forward (pre-LN, residual) ----
    x2 = _layer_norm(attn_out, ln2g_ref[...], ln2b_ref[...])
    h1 = jnp.maximum(
        jnp.dot(x2, w1_ref[...],
                preferred_element_type=jnp.float32) + b1_ref[...], 0.0)
    ff = jnp.dot(h1, w2_ref[...],
                 preferred_element_type=jnp.float32) + b2_ref[...]

    out_ref[0] = attn_out + ff


def transformer_encoder_layer(x, valid_len, params, *, num_heads):
    """x: (B, S, D) f32; valid_len: (B,) int32 key-padding lengths."""
    B, S, D = x.shape
    d_k = D // num_heads
    d_ff = params["w1"].shape[1]
    f32 = jnp.float32

    # fused QKV weight / bias (column-concat is exactly the three separate matmuls)
    wqkv = jnp.concatenate([params["wq"], params["wk"], params["wv"]], axis=1).astype(f32)
    bqkv = jnp.concatenate([params["bq"], params["bk"], params["bv"]], axis=1).astype(f32)

    def full(shape):
        return pl.BlockSpec(shape, lambda b, vlen: (0,) * len(shape))

    in_specs = [
        pl.BlockSpec((1, S, D), lambda b, vlen: (b, 0, 0)),   # x
        full((1, D)), full((1, D)),                           # ln1 gamma/beta
        full((D, 3 * D)), full((1, 3 * D)),                   # fused wqkv, bqkv
        full((D, D)), full((1, D)),                           # w_o, b_o
        full((1, D)), full((1, D)),                           # ln2 gamma/beta
        full((D, d_ff)), full((1, d_ff)),                     # w1, b1
        full((d_ff, D)), full((1, D)),                        # w2, b2
    ]

    kernel = functools.partial(_encoder_layer_kernel, num_heads, d_k)

    return pl.pallas_call(
        kernel,
        out_shape=jax.ShapeDtypeStruct((B, S, D), jnp.float32),
        grid_spec=pltpu.PrefetchScalarGridSpec(
            num_scalar_prefetch=1,                            # valid_len -> SMEM
            grid=(B,),
            in_specs=in_specs,
            out_specs=pl.BlockSpec((1, S, D), lambda b, vlen: (b, 0, 0)),
        ),
        compiler_params=pltpu.CompilerParams(
            dimension_semantics=("parallel",)),
    )(valid_len, x,
      params["ln1_g"], params["ln1_b"],
      wqkv, bqkv, params["wo"], params["bo"],
      params["ln2_g"], params["ln2_b"],
      params["w1"], params["b1"], params["w2"], params["b2"])


# ---------------- pure-JAX reference (full f32, mirrors the PyTorch module) ----------------
def _reference(x, valid_len, params, *, num_heads):
    B, S, D = x.shape
    H = num_heads
    d_k = D // H

    def ln(v, g, b):
        mu = jnp.mean(v, axis=-1, keepdims=True)
        var = jnp.mean((v - mu) ** 2, axis=-1, keepdims=True)
        return (v - mu) * lax.rsqrt(var + 1e-6) * g + b

    x_norm = ln(x, params["ln1_g"], params["ln1_b"])
    q = x_norm @ params["wq"] + params["bq"]
    k = x_norm @ params["wk"] + params["bk"]
    v = x_norm @ params["wv"] + params["bv"]
    q = q.reshape(B, S, H, d_k).transpose(0, 2, 1, 3)
    k = k.reshape(B, S, H, d_k).transpose(0, 2, 1, 3)
    v = v.reshape(B, S, H, d_k).transpose(0, 2, 1, 3)

    scores = jnp.einsum('bhqd,bhkd->bhqk', q, k) / math.sqrt(d_k)
    col = jnp.arange(S)[None, None, None, :]
    keep = col < valid_len[:, None, None, None]
    scores = jnp.where(keep, scores, -1e30)
    m = jnp.max(scores, axis=-1, keepdims=True)
    p = jnp.exp(scores - m)
    attn = p / jnp.sum(p, axis=-1, keepdims=True)

    ctx = jnp.einsum('bhqk,bhkd->bhqd', attn, v)
    ctx = ctx.transpose(0, 2, 1, 3).reshape(B, S, D)

    attn_out = ctx @ params["wo"] + params["bo"] + x
    x2 = ln(attn_out, params["ln2_g"], params["ln2_b"])
    h1 = jnp.maximum(x2 @ params["w1"] + params["b1"], 0.0)
    return attn_out + h1 @ params["w2"] + params["b2"]


if __name__ == "__main__":
    B, S, D, H, FF = 2, 16, 128, 4, 256

    key = jax.random.PRNGKey(0)
    ks = jax.random.split(key, 13)

    params = {
        "ln1_g": jnp.ones((1, D), jnp.float32),
        "ln1_b": jnp.zeros((1, D), jnp.float32),
        "wq": 0.1 * jax.random.normal(ks[0], (D, D), jnp.float32),
        "bq": 0.1 * jax.random.normal(ks[1], (1, D), jnp.float32),
        "wk": 0.1 * jax.random.normal(ks[2], (D, D), jnp.float32),
        "bk": 0.1 * jax.random.normal(ks[3], (1, D), jnp.float32),
        "wv": 0.1 * jax.random.normal(ks[4], (D, D), jnp.float32),
        "bv": 0.1 * jax.random.normal(ks[5], (1, D), jnp.float32),
        "wo": 0.1 * jax.random.normal(ks[6], (D, D), jnp.float32),
        "bo": 0.1 * jax.random.normal(ks[7], (1, D), jnp.float32),
        "ln2_g": jnp.ones((1, D), jnp.float32),
        "ln2_b": jnp.zeros((1, D), jnp.float32),
        "w1": 0.1 * jax.random.normal(ks[8], (D, FF), jnp.float32),
        "b1": 0.1 * jax.random.normal(ks[9], (1, FF), jnp.float32),
        "w2": 0.1 * jax.random.normal(ks[10], (FF, D), jnp.float32),
        "b2": 0.1 * jax.random.normal(ks[11], (1, D), jnp.float32),
    }

    x = jax.random.normal(ks[12], (B, S, D), jnp.float32)

    # key-padding lengths: batch 0 attends to all 16 keys, batch 1 to first 11.
    valid_len = jnp.array([S, S - 5], dtype=jnp.int32)

    out = transformer_encoder_layer(x, valid_len, params, num_heads=H)
    out = jax.block_until_ready(out)

    ref = _reference(x, valid_len, params, num_heads=H)
    assert out.shape == (B, S, D)
    max_err = float(jnp.max(jnp.abs(out - ref)))
    assert jnp.allclose(out, ref, atol=5e-2, rtol=5e-2), \
        f"mismatch vs reference (max err {max_err})"

    print("KERNEL_OK")
</pallas_src>

<mosaic_0001>
module attributes {stable_mosaic.version = 11 : i64} {
  func.func @_encoder_layer_kernel(%arg0: i32, %arg1: memref<2xi32, #tpu.memory_space<smem>>, %arg2: memref<1x16x128xf32, #tpu.memory_space<vmem>>, %arg3: memref<1x128xf32, #tpu.memory_space<vmem>>, %arg4: memref<1x128xf32, #tpu.memory_space<vmem>>, %arg5: memref<128x384xf32, #tpu.memory_space<vmem>>, %arg6: memref<1x384xf32, #tpu.memory_space<vmem>>, %arg7: memref<128x128xf32, #tpu.memory_space<vmem>>, %arg8: memref<1x128xf32, #tpu.memory_space<vmem>>, %arg9: memref<1x128xf32, #tpu.memory_space<vmem>>, %arg10: memref<1x128xf32, #tpu.memory_space<vmem>>, %arg11: memref<128x256xf32, #tpu.memory_space<vmem>>, %arg12: memref<1x256xf32, #tpu.memory_space<vmem>>, %arg13: memref<256x128xf32, #tpu.memory_space<vmem>>, %arg14: memref<1x128xf32, #tpu.memory_space<vmem>>, %arg15: memref<1x16x128xf32, #tpu.memory_space<vmem>>) attributes {dimension_semantics = [#tpu.dimension_semantics<parallel>], iteration_bounds = array<i64: 2>, scalar_prefetch = 1 : i64, scratch_operands = 0 : i64, tpu.core_type = #tpu.core_type<tc>, window_params = [{transform_indices = @transform_0, window_bounds = array<i64: 1, 16, 128>}, {pipeline_mode = #tpu.pipeline_mode<synchronous>, transform_indices = @transform_1, window_bounds = array<i64: 1, 128>}, {pipeline_mode = #tpu.pipeline_mode<synchronous>, transform_indices = @transform_2, window_bounds = array<i64: 1, 128>}, {pipeline_mode = #tpu.pipeline_mode<synchronous>, transform_indices = @transform_3, window_bounds = array<i64: 128, 384>}, {pipeline_mode = #tpu.pipeline_mode<synchronous>, transform_indices = @transform_4, window_bounds = array<i64: 1, 384>}, {pipeline_mode = #tpu.pipeline_mode<synchronous>, transform_indices = @transform_5, window_bounds = array<i64: 128, 128>}, {pipeline_mode = #tpu.pipeline_mode<synchronous>, transform_indices = @transform_6, window_bounds = array<i64: 1, 128>}, {pipeline_mode = #tpu.pipeline_mode<synchronous>, transform_indices = @transform_7, window_bounds = array<i64: 1, 128>}, {pipeline_mode = #tpu.pipeline_mode<synchronous>, transform_indices = @transform_8, window_bounds = array<i64: 1, 128>}, {pipeline_mode = #tpu.pipeline_mode<synchronous>, transform_indices = @transform_9, window_bounds = array<i64: 128, 256>}, {pipeline_mode = #tpu.pipeline_mode<synchronous>, transform_indices = @transform_10, window_bounds = array<i64: 1, 256>}, {pipeline_mode = #tpu.pipeline_mode<synchronous>, transform_indices = @transform_11, window_bounds = array<i64: 256, 128>}, {pipeline_mode = #tpu.pipeline_mode<synchronous>, transform_indices = @transform_12, window_bounds = array<i64: 1, 128>}, {transform_indices = @transform_13, window_bounds = array<i64: 1, 16, 128>}]} {
    %0 = arith.index_cast %arg0 : i32 to index
    %1 = memref.load %arg1[%0] : memref<2xi32, #tpu.memory_space<smem>>
    %c0 = arith.constant 0 : index
    %c0_0 = arith.constant 0 : index
    %c0_1 = arith.constant 0 : index
    %2 = vector.load %arg2[%c0, %c0_0, %c0_1] : memref<1x16x128xf32, #tpu.memory_space<vmem>>, vector<1x16x128xf32>
    %3 = vector.shape_cast %2 : vector<1x16x128xf32> to vector<16x128xf32>
    %c0_2 = arith.constant 0 : index
    %c0_3 = arith.constant 0 : index
    %4 = vector.load %arg3[%c0_2, %c0_3] : memref<1x128xf32, #tpu.memory_space<vmem>>, vector<1x128xf32>
    %c0_4 = arith.constant 0 : index
    %c0_5 = arith.constant 0 : index
    %5 = vector.load %arg4[%c0_4, %c0_5] : memref<1x128xf32, #tpu.memory_space<vmem>>, vector<1x128xf32>
    %cst = arith.constant dense<0.000000e+00> : vector<16xf32>
    %6 = vector.multi_reduction <add>, %3, %cst [1] : vector<16x128xf32> to vector<16xf32>
    %7 = vector.shape_cast %6 : vector<16xf32> to vector<16x1xf32>
    %cst_6 = arith.constant 1.280000e+02 : f32
    %8 = vector.broadcast %cst_6 : f32 to vector<16x1xf32>
    %9 = arith.divf %7, %8 : vector<16x1xf32>
    %10 = vector.broadcast %9 : vector<16x1xf32> to vector<16x128xf32>
    %11 = arith.subf %3, %10 : vector<16x128xf32>
    %12 = vector.broadcast %9 : vector<16x1xf32> to vector<16x128xf32>
    %13 = arith.subf %3, %12 : vector<16x128xf32>
    %14 = arith.mulf %11, %13 : vector<16x128xf32>
    %cst_7 = arith.constant dense<0.000000e+00> : vector<16xf32>
    %15 = vector.multi_reduction <add>, %14, %cst_7 [1] : vector<16x128xf32> to vector<16xf32>
    %16 = vector.shape_cast %15 : vector<16xf32> to vector<16x1xf32>
    %cst_8 = arith.constant 1.280000e+02 : f32
    %17 = vector.broadcast %cst_8 : f32 to vector<16x1xf32>
    %18 = arith.divf %16, %17 : vector<16x1xf32>
    %19 = vector.broadcast %9 : vector<16x1xf32> to vector<16x128xf32>
    %20 = arith.subf %3, %19 : vector<16x128xf32>
    %cst_9 = arith.constant 9.99999997E-7 : f32
    %21 = vector.broadcast %cst_9 : f32 to vector<16x1xf32>
    %22 = arith.addf %18, %21 : vector<16x1xf32>
    %23 = math.rsqrt %22 : vector<16x1xf32>
    %24 = vector.broadcast %23 : vector<16x1xf32> to vector<16x128xf32>
    %25 = arith.mulf %20, %24 : vector<16x128xf32>
    %26 = vector.broadcast %4 : vector<1x128xf32> to vector<16x128xf32>
    %27 = arith.mulf %25, %26 : vector<16x128xf32>
    %28 = vector.broadcast %5 : vector<1x128xf32> to vector<16x128xf32>
    %29 = arith.addf %27, %28 : vector<16x128xf32>
    %c0_10 = arith.constant 0 : index
    %c0_11 = arith.constant 0 : index
    %30 = vector.load %arg5[%c0_10, %c0_11] : memref<128x384xf32, #tpu.memory_space<vmem>>, vector<128x384xf32>
    %cst_12 = arith.constant dense<0.000000e+00> : vector<16x384xf32>
    %31 = tpu.matmul %29, %30, %cst_12 {dimension_numbers = #tpu.dot_dimension_numbers<[1], [0], [0], [1], [0, 0, 1, 1], [], []>} : vector<16x128xf32>, vector<128x384xf32>, vector<16x384xf32> -> vector<16x384xf32>
    %c0_13 = arith.constant 0 : index
    %c0_14 = arith.constant 0 : index
    %32 = vector.load %arg6[%c0_13, %c0_14] : memref<1x384xf32, #tpu.memory_space<vmem>>, vector<1x384xf32>
    %33 = vector.broadcast %32 : vector<1x384xf32> to vector<16x384xf32>
    %34 = arith.addf %31, %33 : vector<16x384xf32>
    %35 = vector.extract_strided_slice %34 {offsets = [0, 0], sizes = [16, 128], strides = [1, 1]} : vector<16x384xf32> to vector<16x128xf32>
    %36 = vector.extract_strided_slice %34 {offsets = [0, 128], sizes = [16, 128], strides = [1, 1]} : vector<16x384xf32> to vector<16x128xf32>
    %37 = vector.extract_strided_slice %34 {offsets = [0, 256], sizes = [16, 128], strides = [1, 1]} : vector<16x384xf32> to vector<16x128xf32>
    %38 = vector.shape_cast %35 : vector<16x128xf32> to vector<16x4x32xf32>
    %39 = tpu.transpose %38, [1, 0, 2] : vector<16x4x32xf32> -> vector<4x16x32xf32>
    %40 = vector.shape_cast %36 : vector<16x128xf32> to vector<16x4x32xf32>
    %41 = tpu.transpose %40, [1, 0, 2] : vector<16x4x32xf32> -> vector<4x16x32xf32>
    %42 = vector.shape_cast %37 : vector<16x128xf32> to vector<16x4x32xf32>
    %43 = tpu.transpose %42, [1, 0, 2] : vector<16x4x32xf32> -> vector<4x16x32xf32>
    "tpu.trace_start"() <{level = 10 : i32, message = "hqd,hkd->hqk"}> : () -> ()
    %cst_15 = arith.constant dense<0.000000e+00> : vector<4x16x16xf32>
    %44 = tpu.matmul %39, %41, %cst_15 {dimension_numbers = #tpu.dot_dimension_numbers<[2], [2], [1], [1], [0, 0, 0, 1, 1, 1], [0], [0]>} : vector<4x16x32xf32>, vector<4x16x32xf32>, vector<4x16x16xf32> -> vector<4x16x16xf32>
    "tpu.trace_stop"() : () -> ()
    %cst_16 = arith.constant 0.176776692 : f32
    %45 = vector.broadcast %cst_16 : f32 to vector<4x16x16xf32>
    %46 = arith.mulf %44, %45 : vector<4x16x16xf32>
    %47 = tpu.iota {dimensions = array<i32: 1>} : vector<16x16xi32>
    %48 = vector.broadcast %1 : i32 to vector<16x16xi32>
    %49 = arith.cmpi slt, %47, %48 : vector<16x16xi32>
    %50 = vector.shape_cast %49 : vector<16x16xi1> to vector<1x16x16xi1>
    %cst_17 = arith.constant -1.000000e+30 : f32
    %51 = vector.shape_cast %50 : vector<1x16x16xi1> to vector<1x16x16xi1>
    %52 = vector.broadcast %51 : vector<1x16x16xi1> to vector<4x16x16xi1>
    %53 = vector.broadcast %cst_17 : f32 to vector<4x16x16xf32>
    %54 = arith.select %52, %46, %53 : vector<4x16x16xi1>, vector<4x16x16xf32>
    %cst_18 = arith.constant dense<0xFF800000> : vector<4x16xf32>
    %55 = vector.multi_reduction <maximumf>, %54, %cst_18 [2] : vector<4x16x16xf32> to vector<4x16xf32>
    %56 = vector.shape_cast %55 : vector<4x16xf32> to vector<4x16x1xf32>
    %57 = vector.broadcast %56 : vector<4x16x1xf32> to vector<4x16x16xf32>
    %58 = arith.subf %54, %57 : vector<4x16x16xf32>
    %59 = math.exp %58 : vector<4x16x16xf32>
    %cst_19 = arith.constant dense<0.000000e+00> : vector<4x16xf32>
    %60 = vector.multi_reduction <add>, %59, %cst_19 [2] : vector<4x16x16xf32> to vector<4x16xf32>
    %61 = vector.shape_cast %60 : vector<4x16xf32> to vector<4x16x1xf32>
    %62 = vector.broadcast %61 : vector<4x16x1xf32> to vector<4x16x16xf32>
    %63 = arith.divf %59, %62 : vector<4x16x16xf32>
    "tpu.trace_start"() <{level = 10 : i32, message = "hqk,hkd->hqd"}> : () -> ()
    %cst_20 = arith.constant dense<0.000000e+00> : vector<4x16x32xf32>
    %64 = tpu.matmul %63, %43, %cst_20 {dimension_numbers = #tpu.dot_dimension_numbers<[2], [1], [1], [2], [0, 0, 0, 1, 1, 2], [0], [0]>} : vector<4x16x16xf32>, vector<4x16x32xf32>, vector<4x16x32xf32> -> vector<4x16x32xf32>
    "tpu.trace_stop"() : () -> ()
    %65 = tpu.transpose %64, [1, 0, 2] : vector<4x16x32xf32> -> vector<16x4x32xf32>
    %66 = vector.shape_cast %65 : vector<16x4x32xf32> to vector<16x128xf32>
    %c0_21 = arith.constant 0 : index
    %c0_22 = arith.constant 0 : index
    %67 = vector.load %arg7[%c0_21, %c0_22] : memref<128x128xf32, #tpu.memory_space<vmem>>, vector<128x128xf32>
    %cst_23 = arith.constant dense<0.000000e+00> : vector<16x128xf32>
    %68 = tpu.matmul %66, %67, %cst_23 {dimension_numbers = #tpu.dot_dimension_numbers<[1], [0], [0], [1], [0, 0, 1, 1], [], []>} : vector<16x128xf32>, vector<128x128xf32>, vector<16x128xf32> -> vector<16x128xf32>
    %c0_24 = arith.constant 0 : index
    %c0_25 = arith.constant 0 : index
    %69 = vector.load %arg8[%c0_24, %c0_25] : memref<1x128xf32, #tpu.memory_space<vmem>>, vector<1x128xf32>
    %70 = vector.broadcast %69 : vector<1x128xf32> to vector<16x128xf32>
    %71 = arith.addf %68, %70 : vector<16x128xf32>
    %72 = arith.addf %71, %3 : vector<16x128xf32>
    %c0_26 = arith.constant 0 : index
    %c0_27 = arith.constant 0 : index
    %73 = vector.load %arg9[%c0_26, %c0_27] : memref<1x128xf32, #tpu.memory_space<vmem>>, vector<1x128xf32>
    %c0_28 = arith.constant 0 : index
    %c0_29 = arith.constant 0 : index
    %74 = vector.load %arg10[%c0_28, %c0_29] : memref<1x128xf32, #tpu.memory_space<vmem>>, vector<1x128xf32>
    %cst_30 = arith.constant dense<0.000000e+00> : vector<16xf32>
    %75 = vector.multi_reduction <add>, %72, %cst_30 [1] : vector<16x128xf32> to vector<16xf32>
    %76 = vector.shape_cast %75 : vector<16xf32> to vector<16x1xf32>
    %cst_31 = arith.constant 1.280000e+02 : f32
    %77 = vector.broadcast %cst_31 : f32 to vector<16x1xf32>
    %78 = arith.divf %76, %77 : vector<16x1xf32>
    %79 = vector.broadcast %78 : vector<16x1xf32> to vector<16x128xf32>
    %80 = arith.subf %72, %79 : vector<16x128xf32>
    %81 = vector.broadcast %78 : vector<16x1xf32> to vector<16x128xf32>
    %82 = arith.subf %72, %81 : vector<16x128xf32>
    %83 = arith.mulf %80, %82 : vector<16x128xf32>
    %cst_32 = arith.constant dense<0.000000e+00> : vector<16xf32>
    %84 = vector.multi_reduction <add>, %83, %cst_32 [1] : vector<16x128xf32> to vector<16xf32>
    %85 = vector.shape_cast %84 : vector<16xf32> to vector<16x1xf32>
    %cst_33 = arith.constant 1.280000e+02 : f32
    %86 = vector.broadcast %cst_33 : f32 to vector<16x1xf32>
    %87 = arith.divf %85, %86 : vector<16x1xf32>
    %88 = vector.broadcast %78 : vector<16x1xf32> to vector<16x128xf32>
    %89 = arith.subf %72, %88 : vector<16x128xf32>
    %cst_34 = arith.constant 9.99999997E-7 : f32
    %90 = vector.broadcast %cst_34 : f32 to vector<16x1xf32>
    %91 = arith.addf %87, %90 : vector<16x1xf32>
    %92 = math.rsqrt %91 : vector<16x1xf32>
    %93 = vector.broadcast %92 : vector<16x1xf32> to vector<16x128xf32>
    %94 = arith.mulf %89, %93 : vector<16x128xf32>
    %95 = vector.broadcast %73 : vector<1x128xf32> to vector<16x128xf32>
    %96 = arith.mulf %94, %95 : vector<16x128xf32>
    %97 = vector.broadcast %74 : vector<1x128xf32> to vector<16x128xf32>
    %98 = arith.addf %96, %97 : vector<16x128xf32>
    %c0_35 = arith.constant 0 : index
    %c0_36 = arith.constant 0 : index
    %99 = vector.load %arg11[%c0_35, %c0_36] : memref<128x256xf32, #tpu.memory_space<vmem>>, vector<128x256xf32>
    %cst_37 = arith.constant dense<0.000000e+00> : vector<16x256xf32>
    %100 = tpu.matmul %98, %99, %cst_37 {dimension_numbers = #tpu.dot_dimension_numbers<[1], [0], [0], [1], [0, 0, 1, 1], [], []>} : vector<16x128xf32>, vector<128x256xf32>, vector<16x256xf32> -> vector<16x256xf32>
    %c0_38 = arith.constant 0 : index
    %c0_39 = arith.constant 0 : index
    %101 = vector.load %arg12[%c0_38, %c0_39] : memref<1x256xf32, #tpu.memory_space<vmem>>, vector<1x256xf32>
    %102 = vector.broadcast %101 : vector<1x256xf32> to vector<16x256xf32>
    %103 = arith.addf %100, %102 : vector<16x256xf32>
    %cst_40 = arith.constant 0.000000e+00 : f32
    %104 = vector.broadcast %cst_40 : f32 to vector<16x256xf32>
    %105 = arith.maximumf %103, %104 : vector<16x256xf32>
    %c0_41 = arith.constant 0 : index
    %c0_42 = arith.constant 0 : index
    %106 = vector.load %arg13[%c0_41, %c0_42] : memref<256x128xf32, #tpu.memory_space<vmem>>, vector<256x128xf32>
    %cst_43 = arith.constant dense<0.000000e+00> : vector<16x128xf32>
    %107 = tpu.matmul %105, %106, %cst_43 {dimension_numbers = #tpu.dot_dimension_numbers<[1], [0], [0], [1], [0, 0, 1, 1], [], []>} : vector<16x256xf32>, vector<256x128xf32>, vector<16x128xf32> -> vector<16x128xf32>
    %c0_44 = arith.constant 0 : index
    %c0_45 = arith.constant 0 : index
    %108 = vector.load %arg14[%c0_44, %c0_45] : memref<1x128xf32, #tpu.memory_space<vmem>>, vector<1x128xf32>
    %109 = vector.broadcast %108 : vector<1x128xf32> to vector<16x128xf32>
    %110 = arith.addf %107, %109 : vector<16x128xf32>
    %111 = arith.addf %72, %110 : vector<16x128xf32>
    %c0_46 = arith.constant 0 : index
    %c0_47 = arith.constant 0 : index
    %c0_48 = arith.constant 0 : index
    %112 = vector.load %arg15[%c0_46, %c0_47, %c0_48] : memref<1x16x128xf32, #tpu.memory_space<vmem>>, vector<1x16x128xf32>
    %113 = vector.shape_cast %112 : vector<1x16x128xf32> to vector<16x128xf32>
    %114 = vector.shape_cast %111 : vector<16x128xf32> to vector<1x16x128xf32>
    tpu.vector_store %arg15[%c0_46, %c0_47, %c0_48], %114 {strides = array<i32>} : memref<1x16x128xf32, #tpu.memory_space<vmem>>, vector<1x16x128xf32>,
    return
  }
  func.func @transform_0(%arg0: i32, %arg1: memref<2xi32, #tpu.memory_space<smem>>) -> (i32, i32, i32) {
    %c0_i32 = arith.constant 0 : i32
    %c0_i32_0 = arith.constant 0 : i32
    %c0_i32_1 = arith.constant 0 : i32
    return %arg0, %c0_i32, %c0_i32_0 : i32, i32, i32
  }
  func.func @transform_1(%arg0: i32, %arg1: memref<2xi32, #tpu.memory_space<smem>>) -> (i32, i32) {
    %c0_i32 = arith.constant 0 : i32
    %c0_i32_0 = arith.constant 0 : i32
    %c0_i32_1 = arith.constant 0 : i32
    return %c0_i32, %c0_i32_0 : i32, i32
  }
  func.func @transform_2(%arg0: i32, %arg1: memref<2xi32, #tpu.memory_space<smem>>) -> (i32, i32) {
    %c0_i32 = arith.constant 0 : i32
    %c0_i32_0 = arith.constant 0 : i32
    %c0_i32_1 = arith.constant 0 : i32
    return %c0_i32, %c0_i32_0 : i32, i32
  }
  func.func @transform_3(%arg0: i32, %arg1: memref<2xi32, #tpu.memory_space<smem>>) -> (i32, i32) {
    %c0_i32 = arith.constant 0 : i32
    %c0_i32_0 = arith.constant 0 : i32
    %c0_i32_1 = arith.constant 0 : i32
    return %c0_i32, %c0_i32_0 : i32, i32
  }
  func.func @transform_4(%arg0: i32, %arg1: memref<2xi32, #tpu.memory_space<smem>>) -> (i32, i32) {
    %c0_i32 = arith.constant 0 : i32
    %c0_i32_0 = arith.constant 0 : i32
    %c0_i32_1 = arith.constant 0 : i32
    return %c0_i32, %c0_i32_0 : i32, i32
  }
  func.func @transform_5(%arg0: i32, %arg1: memref<2xi32, #tpu.memory_space<smem>>) -> (i32, i32) {
    %c0_i32 = arith.constant 0 : i32
    %c0_i32_0 = arith.constant 0 : i32
    %c0_i32_1 = arith.constant 0 : i32
    return %c0_i32, %c0_i32_0 : i32, i32
  }
  func.func @transform_6(%arg0: i32, %arg1: memref<2xi32, #tpu.memory_space<smem>>) -> (i32, i32) {
    %c0_i32 = arith.constant 0 : i32
    %c0_i32_0 = arith.constant 0 : i32
    %c0_i32_1 = arith.constant 0 : i32
    return %c0_i32, %c0_i32_0 : i32, i32
  }
  func.func @transform_7(%arg0: i32, %arg1: memref<2xi32, #tpu.memory_space<smem>>) -> (i32, i32) {
    %c0_i32 = arith.constant 0 : i32
    %c0_i32_0 = arith.constant 0 : i32
    %c0_i32_1 = arith.constant 0 : i32
    return %c0_i32, %c0_i32_0 : i32, i32
  }
  func.func @transform_8(%arg0: i32, %arg1: memref<2xi32, #tpu.memory_space<smem>>) -> (i32, i32) {
    %c0_i32 = arith.constant 0 : i32
    %c0_i32_0 = arith.constant 0 : i32
    %c0_i32_1 = arith.constant 0 : i32
    return %c0_i32, %c0_i32_0 : i32, i32
  }
  func.func @transform_9(%arg0: i32, %arg1: memref<2xi32, #tpu.memory_space<smem>>) -> (i32, i32) {
    %c0_i32 = arith.constant 0 : i32
    %c0_i32_0 = arith.constant 0 : i32
    %c0_i32_1 = arith.constant 0 : i32
    return %c0_i32, %c0_i32_0 : i32, i32
  }
  func.func @transform_10(%arg0: i32, %arg1: memref<2xi32, #tpu.memory_space<smem>>) -> (i32, i32) {
    %c0_i32 = arith.constant 0 : i32
    %c0_i32_0 = arith.constant 0 : i32
    %c0_i32_1 = arith.constant 0 : i32
    return %c0_i32, %c0_i32_0 : i32, i32
  }
  func.func @transform_11(%arg0: i32, %arg1: memref<2xi32, #tpu.memory_space<smem>>) -> (i32, i32) {
    %c0_i32 = arith.constant 0 : i32
    %c0_i32_0 = arith.constant 0 : i32
    %c0_i32_1 = arith.constant 0 : i32
    return %c0_i32, %c0_i32_0 : i32, i32
  }
  func.func @transform_12(%arg0: i32, %arg1: memref<2xi32, #tpu.memory_space<smem>>) -> (i32, i32) {
    %c0_i32 = arith.constant 0 : i32
    %c0_i32_0 = arith.constant 0 : i32
    %c0_i32_1 = arith.constant 0 : i32
    return %c0_i32, %c0_i32_0 : i32, i32
  }
  func.func @transform_13(%arg0: i32, %arg1: memref<2xi32, #tpu.memory_space<smem>>) -> (i32, i32, i32) {
    %c0_i32 = arith.constant 0 : i32
    %c0_i32_0 = arith.constant 0 : i32
    %c0_i32_1 = arith.constant 0 : i32
    return %arg0, %c0_i32, %c0_i32_0 : i32, i32, i32
  }
}

</mosaic_0001>

<bundles_post_ra>
// kernel: tpu_custom_call.1
= control target key start
LH: loop header
LB: loop body
LE: loop exit
PB: predicated region body
PF: predicated region fallthrough
CT: control target
= control target key end

     0   :  { %s3157_s16 = smov [#allocation3]   ;;  %s4045_s0 = inlined_call_operand.hbm [shape: s32[2], index: 0, kind: input, shape index: {}]   ;;  %s4046_s1 = inlined_call_operand.hbm [shape: f32[2,16,128], index: 1, kind: input, shape index: {}]   ;;  %s4047_s2 = inlined_call_operand.hbm [shape: f32[1,128], index: 2, kind: input, shape index: {}]   ;;  %s4048_s3 = inlined_call_operand.hbm [shape: f32[1,128], index: 3, kind: input, shape index: {}]   ;;  %s4049_s4 = inlined_call_operand.hbm [shape: f32[128,384], index: 4, kind: input, shape index: {}]   ;;  %s4050_s5 = inlined_call_operand.vmem [shape: f32[1,384], index: 5, kind: input, shape index: {}]   ;;  %s4051_s6 = inlined_call_operand.hbm [shape: f32[128,128], index: 6, kind: input, shape index: {}]   ;;  %s4052_s7 = inlined_call_operand.vmem [shape: f32[1,128], index: 7, kind: input, shape index: {}]   ;;  %s4053_s8 = inlined_call_operand.vmem [shape: f32[1,128], index: 8, kind: input, shape index: {}]   ;;  %s4054_s9 = inlined_call_operand.vmem [shape: f32[1,128], index: 9, kind: input, shape index: {}]   ;;  %s4055_s10 = inlined_call_operand.hbm [shape: f32[128,256], index: 10, kind: input, shape index: {}]   ;;  %s4056_s11 = inlined_call_operand.vmem [shape: f32[1,256], index: 11, kind: input, shape index: {}]   ;;  %s4057_s12 = inlined_call_operand.hbm [shape: f32[256,128], index: 12, kind: input, shape index: {}]   ;;  %s4058_s13 = inlined_call_operand.vmem [shape: f32[1,128], index: 13, kind: input, shape index: {}]   ;;  %s4059_s14 = inlined_call_operand.hbm [shape: f32[2,16,128], index: 14, kind: output, shape index: {}]  }
   0x1   :  { %4063 = sst [smem:[#allocation23_spill]] %s4047_s2  ;;  %s20_s15 = sshll.u32 %s4045_s0, 4  ;;  %s21_s15 = int_to_ptr.hbm [resolvable:$true] %s20_s15 }
   0x2   :  { %4064 = sst [smem:[#allocation24_spill]] %s4048_s3 }
   0x3   :  { %4065 = sst [smem:[#allocation25_spill]] %s4049_s4 }
   0x4   :  { %4066 = sst [smem:[#allocation26_spill]] %s4051_s6 }
   0x5   :  { %4067 = sst [smem:[#allocation27_spill]] %s4055_s10 }
   0x6   :  { %4068 = sst [smem:[#allocation28_spill]] %s4056_s11 }
   0x7   :  { %4069 = sst [smem:[#allocation29_spill]] %s4058_s13 }
   0x8   :  { %4070 = sst [smem:[#allocation30_spill]] %s4059_s14 }
   0x9   :  { %23 = dma.hbm_to_smem %s21_s15, 16, %s3157_s16, [#allocation2] }
   0xa   :  { %3119 = dma.done.wait [#allocation2], 16 }
   0xb   :  { %3120 = vsyncadd [#allocation2], 4294967280 }
   0xc   :  { %26 = sfence }
   0xd   :  { %27 = vsyncpa [#allocation5], 0 }
   0xe   :  { %29 = vsyncpa [#allocation5 + $0x1], 0 }
   0xf   :  { %30 = vsyncpa [#allocation8], 0 }
  0x10   :  { %31 = vsyncpa [#allocation11], 0 }
  0x11   :  { %32 = vsyncpa [#allocation14], 0 }
  0x12   :  { %33 = vsyncpa [#allocation6], 0 }
  0x13   :  { %35 = vsyncpa [#allocation6 + $0x1], 0  ;;  %s3256_s17 = smov 0   ;;  %s3258_s18 = smov 0  }
  0x14   :  { %s3260_s19 = smov 0   ;;  %s3262_s0 = smov 0  }
  0x15 LB: > { %s4071_s2 = sld [smem:[#allocation23_spill]]  ;;  %s3280_s23 = sadd.s32 4294967295, %s3155_s0   ;;  %s3155_s0 = sphi %s3262_s0, %s4094_s0   ;;  %s3151_s19 = sphi %s3260_s19, %s4093_s19   ;;  %s3147_s18 = sphi %s3258_s18, %s4092_s18   ;;  %s3143_s17 = sphi %s3256_s17, %s4091_s17  }
  0x16   : > { %p2615_p0 = scmp.ge.s32.totalorder %s3155_s0, 1  ;;  %p62_p1 = scmp.eq.s32.totalorder %s3280_s23, 0 }
  0x17   : > { %p350_p2 = scmp.lt.s32.totalorder %s3155_s0, 3  ;;  %s3158_s25 = smov [#allocation7]  }
  0x18   : > { %s364_s26 = sshll.u32 %s3158_s25, 4  ;;  %s4073_s4 = sld [smem:[#allocation25_spill]]  ;;  %s365_s26 = int_to_ptr.vmem [resolvable:$true] %s364_s26 }
  0x19   : > { %p3285_p3 = pnand %p2615_p0, %p350_p2  ;;  %s3159_s15 = smov [#allocation10]  }
  0x1a   : > { %s387_s16 = sshll.u32 %s3159_s15, 4  ;;  %s3160_s20 = smov 384   ;;  %s388_s16 = int_to_ptr.vmem [resolvable:$true] %s387_s16 }
  0x1b   : > { %s362_s22 = sshll.u32 %s4071_s2, 4  ;;  %p2694_p5 = pneg %p3285_p3  ;;  %s363_s22 = int_to_ptr.hbm [resolvable:$true] %s362_s22 }
  0x1c   : > { %s3161_s21 = smov 24   ;;  %s4075_s10 = sld [smem:[#allocation27_spill]] }
  0x1d   : > { %p3297_p6 = pnand %p2694_p5, %p62_p1  ;;  %s3162_s2 = smov [#allocation13]  }
  0x1e   : > { %s385_s29 = sshll.u32 %s4073_s4, 4  ;;  %s427_s4 = sshll.u32 %s3162_s2, 4  ;;  %s386_s29 = int_to_ptr.hbm [resolvable:$true] %s385_s29  ;;  %s428_s4 = int_to_ptr.vmem [resolvable:$true] %s427_s4 }
  0x1f   : > { %2697 = dma.hbm_to_vmem [thread:$0]  (!%p3297_p6), %s363_s22, 16, %s365_s26, [#allocation8]  }
  0x20   : > { %2703 = dma.hbm_to_vmem [thread:$0]  (!%p3297_p6), %s386_s29, 6144, %s388_s16, [#allocation11], %s3160_s20, %s3160_s20, %s3161_s21  }
  0x21   : > { %s4076_s3 = sld [smem:[#allocation24_spill]]  ;;  %s3163_s11 = smov 256  }
  0x22   : > { %s425_s28 = sshll.u32 %s4075_s10, 4  ;;  %s3164_s22 = smov 16   ;;  %s426_s28 = int_to_ptr.hbm [resolvable:$true] %s425_s28 }
  0x23   : > { %2709 = dma.hbm_to_vmem [thread:$0]  (!%p3297_p6), %s426_s28, 4096, %s428_s4, [#allocation14], %s3163_s11, %s3163_s11, %s3164_s22  }
  0x24   : > { %s3165_s26 = smov [#allocation9]   ;;  %s4077_s6 = sld [smem:[#allocation26_spill]] }
  0x25   : > { %s376_s29 = sshll.u32 %s3165_s26, 4  ;;  %s3166_s2 = smov [#allocation12]   ;;  %s377_s29 = int_to_ptr.vmem [resolvable:$true] %s376_s29 }
  0x26   : > { %s404_s13 = sshll.u32 %s3166_s2, 4  ;;  %s442_s14 = sshll.u32 %s4057_s12, 4  ;;  %s405_s13 = int_to_ptr.vmem [resolvable:$true] %s404_s13  ;;  %s443_s14 = int_to_ptr.hbm [resolvable:$true] %s442_s14 }
  0x27   : > { %s374_s15 = sshll.u32 %s4076_s3, 4  ;;  %s4061_s25 = smov 128   ;;  %s375_s15 = int_to_ptr.hbm [resolvable:$true] %s374_s15 }
  0x28   : > { %2700 = dma.hbm_to_vmem [thread:$0]  (!%p3297_p6), %s375_s15, 16, %s377_s29, [#allocation8]  }
  0x29   : > { %s4062_s27 = smov 8   ;;  %s3169_s28 = smov [#allocation15]  }
  0x2a   : > { %s402_s21 = sshll.u32 %s4077_s6, 4  ;;  %s444_s15 = sshll.u32 %s3169_s28, 4  ;;  %s403_s21 = int_to_ptr.hbm [resolvable:$true] %s402_s21  ;;  %s445_s15 = int_to_ptr.vmem [resolvable:$true] %s444_s15 }
  0x2b   : > { %2706 = dma.hbm_to_vmem [thread:$0]  (!%p3297_p6), %s403_s21, 2048, %s405_s13, [#allocation11], %s4061_s25, %s4061_s25, %s4062_s27  }
  0x2c   : > { %2712 = dma.hbm_to_vmem [thread:$0]  (!%p3297_p6), %s443_s14, 4096, %s445_s15, [#allocation14], %s4061_s25, %s4061_s25, %s4062_s27  }
  0x2d   : > { %s2614_s22 = sadd.s32 4294967294, %s3155_s0   ;;  %s3333_s26 = sadd.s32 1, %s3155_s0  }
  0x2e   : > { %s45_s29 = ssub.s32 %s3155_s0, %s3333_s26  ;;  %s48_s16 = sadd.s32 1, %s3151_s19 }
  0x2f   : > { %p46_p7 = scmp.eq.s32.totalorder %s45_s29, 0  ;;  %p55_p8 = scmp.ne.s32.totalorder %s3151_s19, %s3147_s18 }
  0x30   : > { %p56_p9 = scmp.eq.s32.totalorder %s3155_s0, 0  ;;  %p61_p10 = scmp.ne.s32.totalorder %s3147_s18, %s3143_s17 }
  0x31   : > { %s3344_s20 = scalar_select %p46_p7, %s3151_s19, %s48_s16  }
  0x32   : > { %p3346_p11 = por %p56_p9, %p55_p8  ;;  %p3352_p12 = por %p62_p1, %p61_p10 }
  0x33   : > { %p337_p13 = scmp.eq.s32.totalorder %s3280_s23, 1  ;;  %p343_p0 = scmp.eq.s32.totalorder %s2614_s22, 1 }
  0x34   : > { %p2727_p2 = scmp.lt.s32.totalorder %s3155_s0, 2  ;;  %s461_s2 = sand.u32 1, %s3151_s19  }
  0x35   : > { %p3359_p5 = por %p337_p13, %p55_p8  ;;  %p3363_p6 = por %p343_p0, %p61_p10 }
  0x36   : > { %s2623_s11 = sshll.u32 %s461_s2, 4  ;;  %s2664_s14 = sshll.u32 %s3155_s0, 4 }
  0x37   : > { %s470_s29 = scalar_lea.hbm %s4046_s1, %s2664_s14  ;;  %s465_s16 = scalar_lea.vmem [#allocation4], %s2623_s11 }
  0x38   : > { %s473_s25 = sshll.u32 %s465_s16, 4  ;;  %s471_s27 = sshll.u32 %s470_s29, 4  ;;  %s474_s25 = int_to_ptr.vmem [resolvable:$true] %s473_s25  ;;  %s472_s27 = int_to_ptr.hbm [resolvable:$true] %s471_s27 }
  0x39   : > { %p3373_p7 = pnand %p2727_p2, %p3346_p11  ;;  %s462_s3 = scalar_lea.sflag [#allocation5], %s461_s2 }
  0x3a   : > { %s3045_s6 = sshra.s32 %s472_s27, 4  ;;  %s3052_s28 = scalar_lea.hbm %s4046_s1, 32  ;;  %s3046_s6 = int_to_ptr.hbm [resolvable:$true] %s3045_s6 }
  0x3b   : > { %s3047_s10 = scalar_lea.hbm %s3046_s6, 16  ;;  %p3049_p9 = pneg %p3373_p7 }
  0x3c   : > { %p3048_p8 = scmp.ne.s32.totalorder %s3046_s6, %s3047_s10  ;;  %p3053_p11 = scmp.lt.s32.totalorder %s3046_s6, %s4046_s1 }
  0x3d   : > { %p3054_p0 = scmp.lt.s32.totalorder %s3052_s28, %s3047_s10 }
  0x3e   : > { %p3050_p10 = pnand %p3049_p9, %p3048_p8 }
  0x3f   : > { %p3055_p2 = por %p3054_p0, %p3053_p11 }
  0x40   : > { %p3051_p13 = pneg %p3050_p10 }
  0x42   : > { %p3056_p4 = pnand %p3055_p2, %p3051_p13 }
  0x44   : > { %3059 = shalt.err (!%p3056_p4)
}
  0x45   : > { %s4083_s2 = smov 8   ;;  %s4084_s29 = smov 128  }
  0x46   : > { %2716 = dma.hbm_to_vmem [thread:$0]  (!%p3373_p7), %s472_s27, 256, %s474_s25, %s462_s3, %s4084_s29, %s4084_s29, %s4083_s2  }
  0x47   : > { %485 = sbr.rel (%p3285_p3) target bundleno = 2038 (0x7f6), region = 72  ;;  %s3393_s16 = sand.u32 (!%p3285_p3), 1, %s3147_s18  }
  0x48   : > { %s2627_s6 = sshll.u32 (!%p3285_p3), %s3393_s16, 4  ;;  %s488_s10 = scalar_lea.sflag (!%p3285_p3), [#allocation5], %s3393_s16 }
  0x49   : > { %s3399_s11 = scalar_lea.vmem (!%p3285_p3), [#allocation4], %s2627_s6 }
  0x4c   : > { %3122 = dma.done.wait (%p3352_p12), %s488_s10, 256  }
  0x4d   : > { %3124 = vsyncadd (%p3352_p12), %s488_s10, 4294967040 }
  0x4e   : > { %3126 = dma.done.wait (%p62_p1), [#allocation8], 32  }
  0x4f   : > { %3128 = vsyncadd (%p62_p1), [#allocation8], 4294967264 }
  0x50   : > { %3130 = dma.done.wait (%p62_p1), [#allocation11], 8192  }
  0x51   : > { %3132 = vsyncadd (%p62_p1), [#allocation11], 4294959104 }
  0x52   : > { %3134 = dma.done.wait (%p62_p1), [#allocation14], 8192  }
  0x53   : > { %3136 = vsyncadd (%p62_p1), [#allocation14], 4294959104  ;;  %v566_v0 = vld [vmem:[%s3399_s11] sm:$0xff]  ;;  %v567_v1 = vld [vmem:[%s3399_s11 + $0x8] sm:$0xff]  ;;  %v3170_v2 = vmov 128.0   ;;  %s3171_s25 = smov 64  }
  0x54   : > { %570 = vadd.xlane.f32.xlu0 %v566_v0  ;;  %2809 = vrcp.f32 %v3170_v2  ;;  %v672_v5 = vld [vmem:[#allocation10 + $0x168] sm:$0xff]  ;;  %v673_v6 = vld [vmem:[#allocation10 + $0x170] sm:$0xff]  ;;  %v674_v7 = vld [vmem:[#allocation10 + $0x178] sm:$0xff]  ;;  %s3172_s27 = smov 96   ;;  %s3173_s21 = smov 32   ;;  %vm773_vm7 = vcmask 1047556  }
  0x55   : > { %683 = vmatpush.msra.mxu0 %v672_v5  ;;  %706 = vmatpush.msra.mxu1 %v673_v6  ;;  %v669_v8 = vld [vmem:[#allocation10 + $0x150] sm:$0xff]  ;;  %v670_v9 = vld [vmem:[#allocation10 + $0x158] sm:$0xff]  ;;  %v671_v10 = vld [vmem:[#allocation10 + $0x160] sm:$0xff]  ;;  %vm1473_vm8 = vcmask 261120   ;;  %s565_s22 = sld [smem:[#allocation3 + %s3280_s23]]  ;;  %vm1636_vm10 = vcmask 130048  }
  0x56   : > { %729 = vmatpush.msra.mxu2 %v674_v7  ;;  %v666_v23 = vld [vmem:[#allocation10 + $0x138] sm:$0xff]  ;;  %v667_v24 = vld [vmem:[#allocation10 + $0x140] sm:$0xff]  ;;  %v668_v25 = vld [vmem:[#allocation10 + $0x148] sm:$0xff]  ;;  %s4087_s3 = sld [smem:[#allocation28_spill]] }
  0x57   : > { %684 = vmatpush.msra.mxu0 %v669_v8  ;;  %707 = vmatpush.msra.mxu1 %v670_v9  ;;  %v663_v26 = vld [vmem:[#allocation10 + $0x120] sm:$0xff]  ;;  %v664_v27 = vld [vmem:[#allocation10 + $0x128] sm:$0xff]  ;;  %v665_v28 = vld [vmem:[#allocation10 + $0x130] sm:$0xff]  ;;  %s4089_s15 = sld [smem:[#allocation30_spill]] }
  0x58   : > { %730 = vmatpush.msra.mxu2 %v671_v10  ;;  %v660_v29 = vld [vmem:[#allocation10 + $0x108] sm:$0xff]  ;;  %v661_v30 = vld [vmem:[#allocation10 + $0x110] sm:$0xff]  ;;  %v662_v31 = vld [vmem:[#allocation10 + $0x118] sm:$0xff] }
  0x59   : > { %685 = vmatpush.msra.mxu0 %v666_v23  ;;  %708 = vmatpush.msra.mxu1 %v667_v24  ;;  %v657_v32 = vld [vmem:[#allocation10 + $0xf0] sm:$0xff]  ;;  %v658_v33 = vld [vmem:[#allocation10 + $0xf8] sm:$0xff]  ;;  %v659_v34 = vld [vmem:[#allocation10 + $0x100] sm:$0xff] }
  0x5a   : > { %v2810_v3 = vpop.eup %2809  ;;  %731 = vmatpush.msra.mxu2 %v668_v25  ;;  %v654_v35 = vld [vmem:[#allocation10 + $0xd8] sm:$0xff]  ;;  %v655_v36 = vld [vmem:[#allocation10 + $0xe0] sm:$0xff]  ;;  %v656_v37 = vld [vmem:[#allocation10 + $0xe8] sm:$0xff] }
  0x5b   : > { %v575_v4 = vmul.f32 128.0, %v2810_v3  ;;  %vm579_vm0 = vweird.f32 %v2810_v3  ;;  %686 = vmatpush.msra.mxu0 %v663_v26  ;;  %709 = vmatpush.msra.mxu1 %v664_v27  ;;  %v651_v38 = vld [vmem:[#allocation10 + $0xc0] sm:$0xff]  ;;  %v652_v39 = vld [vmem:[#allocation10 + $0xc8] sm:$0xff]  ;;  %v653_v40 = vld [vmem:[#allocation10 + $0xd0] sm:$0xff] }
  0x5c   : > { %572 = vadd.xlane.f32.xlu0 %v567_v1  ;;  %732 = vmatpush.msra.mxu2 %v665_v28  ;;  %v648_v41 = vld [vmem:[#allocation10 + $0xa8] sm:$0xff]  ;;  %v649_v42 = vld [vmem:[#allocation10 + $0xb0] sm:$0xff]  ;;  %v650_v43 = vld [vmem:[#allocation10 + $0xb8] sm:$0xff] }
  0x5d   : > { %v576_v11 = vsub.f32 1.0, %v575_v4  ;;  %687 = vmatpush.msra.mxu0 %v660_v29  ;;  %710 = vmatpush.msra.mxu1 %v661_v30  ;;  %v645_v44 = vld [vmem:[#allocation10 + $0x90] sm:$0xff]  ;;  %v646_v45 = vld [vmem:[#allocation10 + $0x98] sm:$0xff]  ;;  %v647_v46 = vld [vmem:[#allocation10 + $0xa0] sm:$0xff]  ;;  %s3095_s24 = scalar_lea.hbm %s4089_s15, 32 }
  0x5e   : > { %733 = vmatpush.msra.mxu2 %v662_v31  ;;  %v642_v47 = vld [vmem:[#allocation10 + $0x78] sm:$0xff]  ;;  %v643_v48 = vld [vmem:[#allocation10 + $0x80] sm:$0xff]  ;;  %v644_v49 = vld [vmem:[#allocation10 + $0x88] sm:$0xff] }
  0x5f   : > { %v577_v12 = vmul.f32 %v2810_v3, %v576_v11  ;;  %688 = vmatpush.msra.mxu0 %v657_v32  ;;  %711 = vmatpush.msra.mxu1 %v658_v33  ;;  %v639_v50 = vld [vmem:[#allocation10 + $0x60] sm:$0xff]  ;;  %v640_v51 = vld [vmem:[#allocation10 + $0x68] sm:$0xff]  ;;  %v641_v52 = vld [vmem:[#allocation10 + $0x70] sm:$0xff] }
  0x60   : > { %734 = vmatpush.msra.mxu2 %v659_v34  ;;  %v636_v53 = vld [vmem:[#allocation10 + $0x48] sm:$0xff]  ;;  %v637_v54 = vld [vmem:[#allocation10 + $0x50] sm:$0xff]  ;;  %v638_v55 = vld [vmem:[#allocation10 + $0x58] sm:$0xff] }
  0x61   : > { %v578_v13 = vadd.f32 %v2810_v3, %v577_v12  ;;  %689 = vmatpush.msra.mxu0 %v654_v35  ;;  %712 = vmatpush.msra.mxu1 %v655_v36  ;;  %v633_v56 = vld [vmem:[#allocation10 + $0x30] sm:$0xff]  ;;  %v634_v57 = vld [vmem:[#allocation10 + $0x38] sm:$0xff]  ;;  %v635_v58 = vld [vmem:[#allocation10 + $0x40] sm:$0xff] }
  0x62   : > { %735 = vmatpush.msra.mxu2 %v656_v37  ;;  %v630_v59 = vld [vmem:[#allocation10 + $0x18] sm:$0xff]  ;;  %v631_v60 = vld [vmem:[#allocation10 + $0x20] sm:$0xff]  ;;  %v632_v61 = vld [vmem:[#allocation10 + $0x28] sm:$0xff] }
  0x63   : > { %v3419_v14 = vsel %vm579_vm0, %v2810_v3, %v578_v13  ;;  %690 = vmatpush.msra.mxu0 %v651_v38  ;;  %713 = vmatpush.msra.mxu1 %v652_v39  ;;  %v627_v62 = vld [vmem:[#allocation10] sm:$0xff]  ;;  %v628_v63 = vld [vmem:[#allocation10 + $0x8] sm:$0xff] }
  0x64   : > { %736 = vmatpush.msra.mxu2 %v653_v40 }
  0x65   : > { %691 = vmatpush.msra.mxu0 %v648_v41  ;;  %714 = vmatpush.msra.mxu1 %v649_v42 }
  0x66   : > { %737 = vmatpush.msra.mxu2 %v650_v43 }
  0x67   : > { %692 = vmatpush.msra.mxu0 %v645_v44  ;;  %715 = vmatpush.msra.mxu1 %v646_v45  ;;  %v3174_v45 = vmov 1983009808  }
  0x68   : > { %738 = vmatpush.msra.mxu2 %v647_v46  ;;  %v778_v46 = vunpack.c.l.s4 %v3174_v45 }
  0x69   : > { %693 = vmatpush.msra.mxu0 %v642_v47  ;;  %716 = vmatpush.msra.mxu1 %v643_v48 }
  0x6a   : > { %739 = vmatpush.msra.mxu2 %v644_v49  ;;  %v3465_v49 = vunpack.c.0.s8 %v778_v46 }
  0x6b   : > { %694 = vmatpush.msra.mxu0 %v639_v50  ;;  %717 = vmatpush.msra.mxu1 %v640_v51  ;;  %v3175_v51 = vmov 1934713408  }
  0x6c   : > { %740 = vmatpush.msra.mxu2 %v641_v52  ;;  %v802_v52 = vunpack.c.l.s4 %v3175_v51 }
  0x6d   : > { %695 = vmatpush.msra.mxu0 %v636_v53  ;;  %718 = vmatpush.msra.mxu1 %v637_v54 }
  0x6e   : > { %741 = vmatpush.msra.mxu2 %v638_v55 }
  0x6f   : > { %696 = vmatpush.msra.mxu0 %v633_v56  ;;  %719 = vmatpush.msra.mxu1 %v634_v57 }
  0x70   : > { %742 = vmatpush.msra.mxu2 %v635_v58 }
  0x71   : > { %697 = vmatpush.msra.mxu0 %v630_v59  ;;  %720 = vmatpush.msra.mxu1 %v631_v60 }
  0x72   : > { %743 = vmatpush.msra.mxu2 %v632_v61 }
  0x73   : > { %698 = vmatpush.msra.mxu0 %v627_v62  ;;  %721 = vmatpush.msra.mxu1 %v628_v63  ;;  %v3472_v63 = vunpack.c.0.s8 %v802_v52 }
  0xc7   : > { %v571_v15 = vpop.xlane.xlu0 %570 }
  0xc8   : > { %v581_v16 = vmul.f32 %v3419_v14, %v571_v15 }
  0xca   : > { %v3422_v17 = vsub.f32 %v566_v0, %v581_v16  ;;  %v629_v0 = vld [vmem:[#allocation10 + $0x10] sm:$0xff]  ;;  %v2803_v16 = vld [vmem:[#allocation7] ss:$0 sm:$0xff] }
  0xcb   : > { %744 = vmatpush.msra.mxu2 %v629_v0 }
  0xcc   : > { %v585_v18 = vmul.f32 %v3422_v17, %v3422_v17 }
  0xce   : > { %587 = vadd.xlane.f32.xlu1 %v585_v18 }
  0xcf   : > { %v573_v19 = vpop.xlane.xlu0 %572 }
  0xd0   : > { %v582_v20 = vmul.f32 %v3419_v14, %v573_v19 }
  0xd2   : > { %v3427_v21 = vsub.f32 %v567_v1, %v582_v20 }
  0xd4   : > { %v586_v22 = vmul.f32 %v3427_v21, %v3427_v21 }
  0xd6   : > { %589 = vadd.xlane.f32.xlu1 %v586_v22  ;;  %v2804_v22 = vld [vmem:[#allocation9] ss:$0 sm:$0xff] }
 0x141   : > { %v588_v1 = vpop.xlane.xlu1 %587 }
 0x142   : > { %v591_v2 = vmul.f32 %v588_v1, %v3419_v14 }
 0x144   : > { %v593_v3 = vadd.f32 1e-06, %v591_v2 }
 0x146   : > { %2811 = vrsqrt.f32 %v593_v3  ;;  %vm601_vm2 = vweird.f32 %v593_v3 }
 0x149   : > { %v590_v4 = vpop.xlane.xlu1 %589 }
 0x14a   : > { %v592_v5 = vmul.f32 %v590_v4, %v3419_v14 }
 0x14c   : > { %v2812_v6 = vpop.eup %2811  ;;  %v594_v7 = vadd.f32 1e-06, %v592_v5 }
 0x14d   : > { %v596_v8 = vmul.f32 %v2812_v6, %v593_v3  ;;  %vm602_vm1 = vweird.f32 %v2812_v6 }
 0x14e   : > { %2813 = vrsqrt.f32 %v594_v7  ;;  %vm603_vm3 = vmor %vm601_vm2, %vm602_vm1  ;;  %vm611_vm5 = vweird.f32 %v594_v7 }
 0x14f   : > { %v597_v9 = vmul.f32 %v2812_v6, %v596_v8 }
 0x151   : > { %v598_v10 = vmul.f32 0.5, %v597_v9 }
 0x153   : > { %v599_v11 = vsub.f32 1.5, %v598_v10 }
 0x154   : > { %v2814_v12 = vpop.eup %2813 }
 0x155   : > { %v600_v13 = vmul.f32 %v2812_v6, %v599_v11  ;;  %v606_v15 = vmul.f32 %v2814_v12, %v594_v7  ;;  %vm612_vm4 = vweird.f32 %v2814_v12 }
 0x156   : > { %vm613_vm6 = vmor %vm611_vm5, %vm612_vm4 }
 0x157   : > { %v604_v18 = vsel %vm603_vm3, %v2812_v6, %v600_v13  ;;  %v607_v19 = vmul.f32 %v2814_v12, %v606_v15 }
 0x158   : > { %v615_v20 = vmul.f32 %v604_v18, %v3422_v17  ;;  %v3438_v17 = vld [vmem:[%s4050_s5] sm:$0x7] }
 0x159   : > { %v608_v23 = vmul.f32 0.5, %v607_v19  ;;  %v678_v32 = vperm.slane %v3438_v17, 1 }
 0x15a   : > { %v620_v24 = vmul.f32 %v2803_v16, %v615_v20 }
 0x15b   : > { %v609_v25 = vsub.f32 1.5, %v608_v23 }
 0x15c   : > { %v625_v26 = vadd.f32 %v2804_v22, %v620_v24 }
 0x15d   : > { %v610_v27 = vmul.f32 %v2814_v12, %v609_v25 }
 0x15e   : > { %699 = vmatmul.f32.vlgmr.msra.gmra.mxu0 %v625_v26  ;;  %722 = vmatmul.f32.vlgmr.msra.gmra.mxu1 %v625_v26 }
 0x15f   : > { %v614_v28 = vsel %vm613_vm6, %v2814_v12, %v610_v27  ;;  %745 = vmatmul.f32.vlgmr.msra.gmra.mxu2 %v625_v26 }
 0x160   : > { %v616_v29 = vmul.f32 %v614_v28, %v3427_v21  ;;  %v677_v21 = vperm.slane %v3438_v17, 0 }
 0x162   : > { %v621_v30 = vmul.f32 %v2803_v16, %v616_v29 }
 0x164   : > { %v626_v31 = vadd.f32 %v2804_v22, %v621_v30 }
 0x166   : > { %702 = vmatmul.f32.gmra.mxu0 %v626_v31  ;;  %725 = vmatmul.f32.gmra.mxu1 %v626_v31 }
 0x167   : > { %748 = vmatmul.f32.gmra.mxu2 %v626_v31 }
 0x1db   : > { %v700_v33 = vpop.f32.mrf.mxu0  ;;  %v723_v34 = vpop.f32.mrf.mxu1 }
 0x1dc   : > { %v724_v35 = vadd.f32 %v723_v34, %v678_v32  ;;  %v3450_v40 = vadd.f32 %v700_v33, %v677_v21 }
 0x1de   : > { %1001 = vrot.lane.b32.xlu2 %v724_v35, %s3171_s25  ;;  %995 = vrot.lane.b32.xlu1 %v724_v35, %s3172_s27  ;;  %v1015_v48 = vrot.slane %v724_v35, 4  ;;  %v775_v34 = vrot.slane %v3450_v40, 4 }
 0x1e3   : > { %v703_v36 = vpop.f32.mrf.mxu0  ;;  %v726_v37 = vpop.f32.mrf.mxu1 }
 0x1e4   : > { %v3444_v38 = vadd.f32 %v703_v36, %v677_v21  ;;  %v727_v39 = vadd.f32 %v726_v37, %v678_v32 }
 0x1e6   : > { %1007 = vrot.lane.b32.xlu2 %v724_v35, %s3173_s21  ;;  %1009 = vrot.lane.b32.xlu0 %v727_v39, %s3173_s21  ;;  %v1071_v56 = vrot.slane %v727_v39, 4 }
 0x1e7   : > { %756 = vrot.lane.b32.xlu1 %v3444_v38, %s3172_s27 }
 0x1ee   : > { %760 = vrot.lane.b32.xlu0 %v3450_v40, %s3171_s25  ;;  %997 = vrot.lane.b32.xlu2 %v727_v39, %s3172_s27 }
 0x1f6   : > { %1003 = vrot.lane.b32.xlu2 %v727_v39, %s3171_s25  ;;  %762 = vrot.lane.b32.xlu0 %v3444_v38, %s3171_s25 }
 0x1fe   : > { %754 = vrot.lane.b32.xlu2 %v3450_v40, %s3172_s27 }
 0x206   : > { %766 = vrot.lane.b32.xlu2 %v3450_v40, %s3173_s21 }
 0x20e   : > { %768 = vrot.lane.b32.xlu2 %v3444_v38, %s3173_s21 }
 0x238   : > { %v1002_v41 = vpop.permute.xlu2 %1001 }
 0x239   : > { %v1013_v43 = vrot.slane %v1002_v41, 4  ;;  %v1016_v50 = vsel %vm773_vm7, %v1002_v41, %v1015_v48 }
 0x23a   : > { %v1024_v58 = vperm.slane %v1016_v50, %v3465_v49 }
 0x23b   : > { %v1014_v47 = vsel %vm773_vm7, %v1013_v43, %v724_v35  ;;  %v831_v35 = vrot.slane %v3444_v38, 4 }
 0x23c   : > { %v1020_v53 = vperm.slane %v1014_v47, %v3465_v49  ;;  %v1051_v6 = vrot.slane %v1024_v58, 4 }
 0x23e   : > { %v1039_v1 = vrot.slane %v1020_v53, 4 }
 0x240   : > { %v1008_v42 = vpop.permute.xlu2 %1007 }
 0x241   : > { %v1025_v54 = vrot.slane %v1008_v42, 4 }
 0x248   : > { %v998_v44 = vpop.permute.xlu2 %997 }
 0x249   : > { %v1083_v12 = vrot.slane %v998_v44, 4 }
 0x250   : > { %v1004_v55 = vpop.permute.xlu2 %1003  ;;  %v996_v57 = vpop.permute.xlu1 %995 }
 0x251   : > { %v1069_v59 = vrot.slane %v1004_v55, 4  ;;  %v1026_v60 = vsel %vm773_vm7, %v1025_v54, %v996_v57  ;;  %v1027_v61 = vrot.slane %v996_v57, 4  ;;  %v1072_v62 = vsel %vm773_vm7, %v1004_v55, %v1071_v56 }
 0x252   : > { %v1032_v0 = vperm.slane %v1026_v60, %v3465_v49  ;;  %v1080_v7 = vperm.slane %v1072_v62, %v3465_v49 }
 0x253   : > { %v1028_v2 = vsel %vm773_vm7, %v1008_v42, %v1027_v61  ;;  %v1070_v3 = vsel %vm773_vm7, %v1069_v59, %v727_v39 }
 0x254   : > { %v1036_v4 = vperm.slane %v1028_v2, %v3465_v49  ;;  %v1037_v5 = vrot.slane %v1032_v0, 4  ;;  %v1040_v8 = vsel %vm773_vm7, %v1032_v0, %v1039_v1  ;;  %v1076_v13 = vperm.slane %v1070_v3, %v3465_v49 }
 0x255   : > { %v1048_v10 = vperm.slane %v1040_v8, %v3472_v63  ;;  %v1107_v24 = vrot.slane %v1080_v7, 4 }
 0x256   : > { %v1038_v9 = vsel %vm773_vm7, %v1037_v5, %v1020_v53  ;;  %v1049_v11 = vrot.slane %v1036_v4, 4  ;;  %v1052_v16 = vsel %vm773_vm7, %v1036_v4, %v1051_v6  ;;  %v1095_v32 = vrot.slane %v1076_v13, 4 }
 0x257   : > { %v1044_v15 = vperm.slane %v1038_v9, %v3472_v63  ;;  %v1060_v19 = vperm.slane %v1052_v16, %v3472_v63  ;;  %v1063_v20 = vrot.slane %v1048_v10, 4 }
 0x258   : > { %v1050_v18 = vsel %vm773_vm7, %v1049_v11, %v1024_v58  ;;  %v1010_v22 = vpop.permute.xlu0 %1009  ;;  %v755_v23 = vpop.permute.xlu2 %754 }
 0x259   : > { %v1056_v25 = vperm.slane %v1050_v18, %v3472_v63  ;;  %v1081_v26 = vrot.slane %v1010_v22, 4  ;;  %v1084_v27 = vsel %vm773_vm7, %v1010_v22, %v1083_v12  ;;  %v1061_v28 = vrot.slane %v1044_v15, 4  ;;  %v757_v46 = vpop.permute.xlu1 %756 }
 0x25a   : > { %v1064_v29 = vsel %vm773_vm7, 0.0, %v1063_v20  ;;  %v1067_v30 = vrot.slane %v1060_v19, 4  ;;  %v1092_v31 = vperm.slane %v1084_v27, %v3465_v49  ;;  %v787_v45 = vrot.slane %v755_v23, 4 }
 0x25b   : > { %v1082_v33 = vsel %vm773_vm7, %v1081_v26, %v998_v44  ;;  %v1065_v21 = vrot.slane %v1056_v25, 4  ;;  %v1130_v42 = vrot.slane %v1064_v29, 4  ;;  %v1062_v44 = vsel %vm773_vm7, 0.0, %v1061_v28 }
 0x25c   : > { %v1088_v36 = vperm.slane %v1082_v33, %v3465_v49  ;;  %v1105_v37 = vrot.slane %v1092_v31, 4  ;;  %v1108_v39 = vsel %vm773_vm7, %v1092_v31, %v1107_v24  ;;  %v3497_v41 = vsel %vm773_vm7, 0.0, %v1067_v30 }
 0x25d   : > { %v1116_v43 = vperm.slane %v1108_v39, %v3472_v63  ;;  %v1125_v54 = vsel %vm773_vm7, %v1063_v20, %v1044_v15  ;;  %v3507_v55 = vsel %vm773_vm7, 0.0, %v1065_v21  ;;  %v1141_v56 = vrot.slane %v3497_v41, 4 }
 0x25e   : > { %v1093_v47 = vrot.slane %v1088_v36, 4  ;;  %v1096_v48 = vsel %vm773_vm7, %v1088_v36, %v1095_v32  ;;  %v1106_v50 = vsel %vm773_vm7, %v1105_v37, %v1080_v7  ;;  %v843_v58 = vrot.slane %v757_v46, 4 }
 0x25f   : > { %v1104_v51 = vperm.slane %v1096_v48, %v3472_v63  ;;  %v1112_v52 = vperm.slane %v1106_v50, %v3472_v63  ;;  %v1123_v53 = vrot.slane %v1116_v43, 4  ;;  %v3513_v0 = vperm.slane %v1125_v54, %v3465_v49 }
 0x260   : > { %v1094_v57 = vsel %vm773_vm7, %v1093_v47, %v1076_v13  ;;  %v761_v59 = vpop.permute.xlu0 %760  ;;  %v767_v60 = vpop.permute.xlu2 %766  ;;  %v3516_v1 = vsel %vm773_vm7, %v1130_v42, %v1062_v44  ;;  %v3532_v26 = vsel %vm773_vm7, %v1067_v30, %v1056_v25 }
 0x261   : > { %v1100_v61 = vperm.slane %v1094_v57, %v3472_v63  ;;  %v1119_v62 = vrot.slane %v1104_v51, 4  ;;  %v1121_v2 = vrot.slane %v1112_v52, 4  ;;  %v1124_v3 = vsel %vm773_vm7, 0.0, %v1123_v53 }
 0x262   : > { %v772_v4 = vrot.slane %v761_v59, 4  ;;  %v776_v5 = vsel %vm773_vm7, %v761_v59, %v775_v34  ;;  %v1190_v8 = vsel %vm773_vm7, %v1123_v53, %v1112_v52  ;;  %v785_v12 = vrot.slane %v767_v60, 4 }
 0x263   : > { %v1117_v6 = vrot.slane %v1100_v61, 4  ;;  %v1120_v7 = vsel %vm773_vm7, 0.0, %v1119_v62  ;;  %v784_v9 = vperm.slane %v776_v5, %v3465_v49  ;;  %v788_v13 = vsel %vm773_vm7, %v767_v60, %v787_v45 }
 0x264   : > { %v1184_v10 = vrot.slane %v1120_v7, 4  ;;  %v774_v11 = vsel %vm773_vm7, %v772_v4, %v3450_v40  ;;  %v796_v18 = vperm.slane %v788_v13, %v3465_v49  ;;  %v1122_v20 = vsel %vm773_vm7, 0.0, %v1121_v2 }
 0x265   : > { %v780_v15 = vperm.slane %v774_v11, %v3465_v49  ;;  %v811_v16 = vrot.slane %v784_v9, 4  ;;  %v1118_v19 = vsel %vm773_vm7, 0.0, %v1117_v6  ;;  %v1195_v22 = vrot.slane %v1124_v3, 4 }
 0x266   : > { %v786_v24 = vsel %vm773_vm7, %v785_v12, %v755_v23  ;;  %v809_v28 = vrot.slane %v796_v18, 4  ;;  %v1179_v34 = vsel %vm773_vm7, %v1119_v62, %v1100_v61  ;;  %v1185_v21 = vsel %vm773_vm7, %v1184_v10, %v1118_v19 }
 0x267   : > { %v799_v27 = vrot.slane %v780_v15, 4  ;;  %v792_v40 = vperm.slane %v786_v24, %v3465_v49  ;;  %v812_v29 = vsel %vm773_vm7, %v796_v18, %v811_v16  ;;  %v1194_v36 = vperm.slane %v1190_v8, %v3465_v49 }
 0x268   : > { %v820_v31 = vperm.slane %v812_v29, %v3472_v63  ;;  %v769_v32 = vpop.permute.xlu2 %768  ;;  %v763_v33 = vpop.permute.xlu0 %762  ;;  %v810_v30 = vsel %vm773_vm7, %v809_v28, %v784_v9  ;;  %v1189_v54 = vperm.slane %v1185_v21, %v3465_v49  ;;  %v1196_v60 = vsel %vm773_vm7, %v1195_v22, %v1122_v20 }
 0x269   : > { %v797_v23 = vrot.slane %v792_v40, 4  ;;  %v800_v25 = vsel %vm773_vm7, %v792_v40, %v799_v27  ;;  %v841_v37 = vrot.slane %v769_v32, 4  ;;  %v816_v42 = vperm.slane %v810_v30, %v3472_v63 }
 0x26a   : > { %v808_v39 = vperm.slane %v800_v25, %v3472_v63  ;;  %v827_v43 = vrot.slane %v820_v31, 4  ;;  %v844_v45 = vsel %vm773_vm7, %v769_v32, %v843_v58  ;;  %v829_v50 = vrot.slane %v763_v33, 4 }
 0x26b   : > { %v798_v44 = vsel %vm773_vm7, %v797_v23, %v780_v15  ;;  %v842_v47 = vsel %vm773_vm7, %v841_v37, %v757_v46  ;;  %v852_v48 = vperm.slane %v844_v45, %v3465_v49  ;;  %v825_v57 = vrot.slane %v816_v42, 4 }
 0x26c   : > { %v3549_v51 = vperm.slane %v798_v44, %v3472_v63  ;;  %v3551_v52 = vrot.slane %v808_v39, 4  ;;  %v828_v53 = vsel %vm773_vm7, 0.0, %v827_v43  ;;  %v848_v59 = vperm.slane %v842_v47, %v3465_v49 }
 0x26d   : > { %v1183_v58 = vperm.slane %v1179_v34, %v3465_v49  ;;  %v3563_v61 = vsel %vm773_vm7, %v827_v43, %v816_v42  ;;  %v865_v62 = vrot.slane %v852_v48, 4  ;;  %v830_v2 = vsel %vm773_vm7, %v829_v50, %v3444_v38 }
 0x26e   : > { %v3560_v46 = vsel %vm773_vm7, 0.0, %v3551_v52  ;;  %v821_v3 = vrot.slane %v3549_v51, 4  ;;  %v901_v4 = vrot.slane %v828_v53, 4  ;;  %v853_v5 = vrot.slane %v848_v59, 4 }
 0x26f   : > { %v832_v6 = vsel %vm773_vm7, %v763_v33, %v831_v35  ;;  %v836_v7 = vperm.slane %v830_v2, %v3465_v49  ;;  %v1200_v9 = vperm.slane %v1196_v60, %v3465_v49  ;;  %v1201_v10 = vrot.slane %v1189_v54, 4 }
 0x270   : > { %v840_v8 = vperm.slane %v832_v6, %v3465_v49  ;;  %v826_v11 = vsel %vm773_vm7, 0.0, %v825_v57  ;;  %v890_v12 = vrot.slane %v3560_v46, 4  ;;  %v1203_v13 = vrot.slane %v1183_v58, 4 }
 0x271   : > { %v1215_v15 = vrot.slane %v1194_v36, 4  ;;  %v854_v16 = vsel %vm773_vm7, %v853_v5, %v836_v7  ;;  %v855_v18 = vrot.slane %v836_v7, 4  ;;  %v1213_v22 = vrot.slane %v1200_v9, 4 }
 0x272   : > { %v866_v38 = vsel %vm773_vm7, %v865_v62, %v840_v8  ;;  %v867_v35 = vrot.slane %v840_v8, 4  ;;  %v3579_v19 = vperm.slane %v854_v16, %v3472_v63  ;;  %v1135_v24 = vperm.slane %v3516_v1, %v3465_v49 }
 0x273   : > { %v872_v20 = vperm.slane %v866_v38, %v3472_v63  ;;  %v856_v27 = vsel %vm773_vm7, %v848_v59, %v855_v18  ;;  %v1202_v28 = vsel %vm773_vm7, %v1201_v10, %v1183_v58  ;;  %v1204_v29 = vsel %vm773_vm7, %v1189_v54, %v1203_v13 }
 0x274   : > { %v868_v40 = vsel %vm773_vm7, %v852_v48, %v867_v35  ;;  %v864_v31 = vperm.slane %v856_v27, %v3472_v63  ;;  %v877_v33 = vrot.slane %v3579_v19, 4  ;;  %v1214_v21 = vsel %vm773_vm7, %v1213_v22, %v1194_v36 }
 0x275   : > { %v876_v32 = vperm.slane %v868_v40, %v3472_v63  ;;  %v881_v34 = vrot.slane %v872_v20, 4  ;;  %v3593_v23 = vperm.slane %v1204_v29, %v3472_v63  ;;  %v1216_v1 = vsel %vm773_vm7, %v1200_v9, %v1215_v15 }
 0x276   : > { %v1142_v25 = vsel %vm773_vm7, %v1141_v56, %v3507_v55  ;;  %v902_v30 = vsel %vm773_vm7, %v901_v4, %v826_v11  ;;  %v879_v37 = vrot.slane %v864_v31, 4  ;;  %v1140_v42 = vperm.slane %v3532_v26, %v3465_v49 }
 0x277   : > { %v883_v39 = vrot.slane %v876_v32, 4  ;;  %v1208_v43 = vperm.slane %v1202_v28, %v3472_v63  ;;  %v1220_v36 = vperm.slane %v1214_v21, %v3472_v63  ;;  %v1231_v45 = vrot.slane %v3593_v23, 4 }
 0x278   : > { %v1146_v44 = vperm.slane %v1142_v25, %v3465_v49  ;;  %v878_v47 = vsel %vm773_vm7, 0.0, %v877_v33  ;;  %v3610_v55 = vperm.slane %v1216_v1, %v3472_v63  ;;  %v1147_v56 = vrot.slane %v1135_v24, 4 }
 0x279   : > { %v884_v41 = vsel %vm773_vm7, 0.0, %v883_v39  ;;  %v880_v48 = vsel %vm773_vm7, 0.0, %v879_v37  ;;  %v882_v26 = vsel %vm773_vm7, 0.0, %v881_v34  ;;  %v1225_v53 = vrot.slane %v1220_v36, 4 }
 0x27a   : > { %v955_v50 = vrot.slane %v884_v41, 4  ;;  %v1232_v54 = vsel %vm773_vm7, %v3610_v55, %v1231_v45  ;;  %v1148_v57 = vsel %vm773_vm7, %v1147_v56, %v3513_v0  ;;  %v1159_v59 = vrot.slane %v1146_v44, 4 }
 0x27b   : > { %v1149_v58 = vrot.slane %v3513_v0, 4  ;;  %v950_v60 = vsel %vm773_vm7, %v883_v39, %v872_v20  ;;  %v1226_v2 = vsel %vm773_vm7, %v1225_v53, %v1208_v43  ;;  %2647 = vmatpush.xpose.msk.msrb.mxu0 %vm1473_vm8, %v1232_v54  ;;  %v1161_v4 = vrot.slane %v1140_v42, 4 }
 0x27c   : > { %v956_v62 = vsel %vm773_vm7, %v955_v50, %v882_v26  ;;  %v944_v5 = vrot.slane %v880_v48, 4  ;;  %2635 = vmatpush.xpose.msk.msra.mxu3 %vm1473_vm8, %v1226_v2  ;;  %v1154_v6 = vperm.slane %v1148_v57, %v3472_v63  ;;  %v1160_v7 = vsel %vm773_vm7, %v1159_v59, %v1140_v42 }
 0x27d   : > { %v1150_v8 = vsel %vm773_vm7, %v1135_v24, %v1149_v58  ;;  %v1229_v0 = vrot.slane %v3610_v55, 4  ;;  %v1166_v9 = vperm.slane %v1160_v7, %v3472_v63  ;;  %v1162_v11 = vsel %vm773_vm7, %v1146_v44, %v1161_v4 }
 0x27e   : > { %v3630_v10 = vperm.slane %v1150_v8, %v3472_v63  ;;  %v960_v13 = vperm.slane %v956_v62, %v3465_v49  ;;  %v1170_v15 = vperm.slane %v1162_v11, %v3472_v63  ;;  %v1227_v16 = vrot.slane %v1208_v43, 4 }
 0x27f   : > { %v885_v18 = vsel %vm773_vm7, %v3551_v52, %v3549_v51  ;;  %v1171_v38 = vrot.slane %v1166_v9, 4  ;;  %v822_v20 = vsel %vm773_vm7, 0.0, %v821_v3  ;;  %v1173_v24 = vrot.slane %v1154_v6, 4 }
 0x280   : > { %v1177_v35 = vrot.slane %v3630_v10, 4  ;;  %v889_v22 = vperm.slane %v885_v18, %v3465_v49  ;;  %v891_v27 = vsel %vm773_vm7, %v890_v12, %v822_v20  ;;  %v900_v40 = vperm.slane %v3563_v61, %v3465_v49 }
 0x281   : > { %v906_v28 = vperm.slane %v902_v30, %v3465_v49  ;;  %v1172_v52 = vsel %vm773_vm7, %v1171_v38, %v1154_v6  ;;  %v895_v51 = vperm.slane %v891_v27, %v3465_v49  ;;  %v1228_v46 = vsel %vm773_vm7, %v1220_v36, %v1227_v16 }
 0x282   : > { %v1178_v29 = vsel %vm773_vm7, %v1170_v15, %v1177_v35  ;;  %v909_v31 = vrot.slane %v889_v22, 4  ;;  %2636 = vmatpush.xpose.msk.msra.mxu3 %vm1473_vm8, %v1172_v52  ;;  %v921_v12 = vrot.slane %v900_v40, 4  ;;  %v939_v61 = vsel %vm773_vm7, %v879_v37, %v3579_v19 }
 0x283   : > { %2648 = vmatpush.xpose.msk.msrb.mxu0 %vm1473_vm8, %v1178_v29  ;;  %v919_v3 = vrot.slane %v906_v28, 4  ;;  %v907_v32 = vrot.slane %v895_v51, 4  ;;  %v943_v34 = vperm.slane %v939_v61, %v3465_v49  ;;  %v945_v21 = vsel %vm773_vm7, %v944_v5, %v878_v47 }
 0x284   : > { %v910_v33 = vsel %vm773_vm7, %v895_v51, %v909_v31  ;;  %v1174_v1 = vsel %vm773_vm7, %v1166_v9, %v1173_v24  ;;  %v922_v39 = vsel %vm773_vm7, %v906_v28, %v921_v12  ;;  %v949_v43 = vperm.slane %v945_v21, %v3465_v49 }
 0x285   : > { %v920_v25 = vsel %vm773_vm7, %v919_v3, %v900_v40  ;;  %v918_v30 = vperm.slane %v910_v33, %v3472_v63  ;;  %v908_v42 = vsel %vm773_vm7, %v907_v32, %v889_v22  ;;  %v930_v37 = vperm.slane %v922_v39, %v3472_v63 }
 0x286   : > { %2639 = vmatpush.xpose.msk.msrb.mxu3 %vm1473_vm8, %v1228_v46  ;;  %v926_v19 = vperm.slane %v920_v25, %v3472_v63  ;;  %v914_v36 = vperm.slane %v908_v42, %v3472_v63  ;;  %v954_v44 = vperm.slane %v950_v60, %v3465_v49  ;;  %v973_v47 = vrot.slane %v960_v13, 4 }
 0x287   : > { %v937_v45 = vrot.slane %v918_v30, 4  ;;  %v961_v55 = vrot.slane %v949_v43, 4  ;;  %v963_v56 = vrot.slane %v943_v34, 4  ;;  %v1230_v58 = vsel %vm773_vm7, %v1229_v0, %v3593_v23 }
 0x288   : > { %v931_v41 = vrot.slane %v926_v19, 4  ;;  %v974_v26 = vsel %vm773_vm7, %v973_v47, %v954_v44  ;;  %v975_v50 = vrot.slane %v954_v44, 4  ;;  %v1175_v60 = vrot.slane %v1170_v15, 4  ;;  %v746_v47 = vpop.f32.mrf.mxu2 }
 0x289   : > { %v938_v48 = vsel %vm773_vm7, %v930_v37, %v937_v45  ;;  %v962_v54 = vsel %vm773_vm7, %v961_v55, %v943_v34  ;;  %v980_v57 = vperm.slane %v974_v26, %v3472_v63  ;;  %v964_v59 = vsel %vm773_vm7, %v949_v43, %v963_v56 }
 0x28a   : > { %2640 = vmatpush.xpose.msk.msrb.mxu3 %vm1473_vm8, %v1174_v1  ;;  %v932_v53 = vsel %vm773_vm7, %v931_v41, %v914_v36  ;;  %2649 = vmatmul.msk.f32.vlgmr.msrb.gmra.mxu0 %vm1473_vm8, %v938_v48  ;;  %v972_v62 = vperm.slane %v964_v59, %v3472_v63  ;;  %v976_v2 = vsel %vm773_vm7, %v960_v13, %v975_v50  ;;  %v933_v0 = vrot.slane %v914_v36, 4 }
 0x28b   : > { %2637 = vmatmul.msk.f32.vlgmr.msra.gmra.mxu3 %vm1473_vm8, %v932_v53  ;;  %v968_v4 = vperm.slane %v962_v54, %v3472_v63  ;;  %v985_v5 = vrot.slane %v980_v57, 4  ;;  %v984_v6 = vperm.slane %v976_v2, %v3472_v63  ;;  %v1176_v8 = vsel %vm773_vm7, %v1175_v60, %v3630_v10 }
 0x28c   : > { %v991_v7 = vrot.slane %v972_v62, 4  ;;  %v934_v11 = vsel %vm773_vm7, %v926_v19, %v933_v0  ;;  %v935_v10 = vrot.slane %v930_v37, 4  ;;  %v1622_v35 = vlaneseq }
 0x28d   : > { %v986_v23 = vsel %vm773_vm7, %v985_v5, %v968_v4  ;;  %v987_v13 = vrot.slane %v968_v4, 4  ;;  %v989_v18 = vrot.slane %v984_v6, 4  ;;  %v1624_v22 = vstv %s565_s22  ;;  %s564_s22 = scalar_lea.vmem [#allocation16], %s2627_s6 }
 0x28e   : > { %2643 = vmatpush.xpose.msk.msra.mxu3 %vm1473_vm8, %v1230_v58  ;;  %v992_v9 = vsel %vm773_vm7, %v984_v6, %v991_v7  ;;  %v936_v16 = vsel %vm773_vm7, %v935_v10, %v918_v30  ;;  %v1623_v20 = vand.u32 127, %v1622_v35  ;;  %v679_v54 = vperm.slane %v3438_v17, 2  ;;  %s2481_s2 = sshll.u32 %s564_s22, 4  ;;  %s2482_s2 = int_to_ptr.vmem [resolvable:$true] %s2481_s2 }
 0x28f   : > { %v988_v15 = vsel %vm773_vm7, %v980_v57, %v987_v13  ;;  %v990_v38 = vsel %vm773_vm7, %v989_v18, %v972_v62 }
 0x290   : > { %vm3703_vm9 = vcmp.lt.s32.totalorder %v1623_v20, %v1624_v22  ;;  %v749_v53 = vpop.f32.mrf.mxu2  ;;  %v3740_v59 = vadd.f32 %v746_v47, %v679_v54 }
 0x291   : > { %v3738_v57 = vadd.f32 %v749_v53, %v679_v54 }
 0x292   : > { %2644 = vmatpush.xpose.msk.msra.mxu3 %vm1473_vm8, %v1176_v8  ;;  %2650 = vmatmul.msk.f32.gmra.mxu0 %vm1473_vm8, %v992_v9 }
 0x293   : > { %2638 = vmatmul.msk.f32.gmra.mxu3 %vm1473_vm8, %v986_v23  ;;  %v2793_v58 = vpack.i.bf16 %v3740_v59, %v3738_v57 }
 0x29b   : > { %2641 = vmatmul.msk.f32.vlgmr.msrb.gmra.mxu3 %vm1473_vm8, %v934_v11 }
 0x2a3   : > { %2642 = vmatmul.msk.f32.gmra.mxu3 %vm1473_vm8, %v988_v15 }
 0x2ab   : > { %2645 = vmatmul.msk.f32.vlgmr.msra.gmra.mxu3 %vm1473_vm8, %v936_v16 }
 0x2b3   : > { %2646 = vmatmul.msk.f32.gmra.mxu3 %vm1473_vm8, %v990_v38 }
 0x307   : > { %v1608_v24 = vpop.f32.mrf.mxu0 }
 0x308   : > { %v1620_v40 = vmul.f32 0.17677669, %v1608_v24 }
 0x30a   : > { %v3709_v28 = vsel %vm3703_vm9, %v1620_v40, -1e+30 }
 0x30b   : > { %v1655_v52 = vsel %vm1636_vm10, %v3709_v28, -inf }
 0x30c   : > { %1656 = vmax.xlane.f32.xlu2 %v1655_v52 }
 0x30e   : > { %v1503_v29 = vpop.f32.mrf.mxu3 }
 0x30f   : > { %v1614_v51 = vmul.f32 0.17677669, %v1503_v29  ;;  %v1611_v31 = vpop.f32.mrf.mxu0 }
 0x310   : > { %v1621_v46 = vmul.f32 0.17677669, %v1611_v31 }
 0x311   : > { %v1628_v3 = vsel %vm3703_vm9, %v1614_v51, -1e+30 }
 0x312   : > { %v1637_v12 = vsel %vm1636_vm10, %v1628_v3, -inf  ;;  %v3718_v61 = vsel %vm3703_vm9, %v1621_v46, -1e+30 }
 0x313   : > { %1638 = vmax.xlane.f32.xlu1 %v1637_v12  ;;  %v1658_v32 = vsel %vm1636_vm10, %v3718_v61, -inf }
 0x314   : > { %1659 = vmax.xlane.f32.xlu0 %v1658_v32 }
 0x316   : > { %v1506_v33 = vpop.f32.mrf.mxu3 }
 0x317   : > { %v1615_v34 = vmul.f32 0.17677669, %v1506_v33 }
 0x319   : > { %v1629_v21 = vsel %vm3703_vm9, %v1615_v34, -1e+30 }
 0x31a   : > { %v1640_v1 = vsel %vm1636_vm10, %v1629_v21, -inf }
 0x31c   : > { %1641 = vmax.xlane.f32.xlu0 %v1640_v1 }
 0x31e   : > { %v1538_v25 = vpop.f32.mrf.mxu3 }
 0x31f   : > { %v1616_v30 = vmul.f32 0.17677669, %v1538_v25 }
 0x321   : > { %v1630_v39 = vsel %vm3703_vm9, %v1616_v30, -1e+30 }
 0x322   : > { %v1643_v42 = vsel %vm1636_vm10, %v1630_v39, -inf }
 0x323   : > { %1644 = vmax.xlane.f32.xlu1 %v1643_v42 }
 0x326   : > { %v1541_v19 = vpop.f32.mrf.mxu3 }
 0x327   : > { %v1617_v37 = vmul.f32 0.17677669, %v1541_v19  ;;  %v1255_v19 = vrot.slane %v3740_v59, 4 }
 0x329   : > { %v1631_v43 = vsel %vm3703_vm9, %v1617_v37, -1e+30 }
 0x32a   : > { %v1646_v36 = vsel %vm1636_vm10, %v1631_v43, -inf }
 0x32b   : > { %1647 = vmax.xlane.f32.xlu1 %v1646_v36 }
 0x32e   : > { %v1573_v45 = vpop.f32.mrf.mxu3 }
 0x32f   : > { %v1618_v44 = vmul.f32 0.17677669, %v1573_v45  ;;  %v1311_v45 = vrot.slane %v3738_v57, 4 }
 0x331   : > { %v1632_v41 = vsel %vm3703_vm9, %v1618_v44, -1e+30 }
 0x332   : > { %v1649_v55 = vsel %vm1636_vm10, %v1632_v41, -inf }
 0x333   : > { %1650 = vmax.xlane.f32.xlu2 %v1649_v55 }
 0x336   : > { %v1576_v56 = vpop.f32.mrf.mxu3 }
 0x337   : > { %v1619_v48 = vmul.f32 0.17677669, %v1576_v56 }
 0x339   : > { %v1633_v26 = vsel %vm3703_vm9, %v1619_v48, -1e+30 }
 0x33a   : > { %v1652_v50 = vsel %vm1636_vm10, %v1633_v26, -inf }
 0x33b   : > { %1653 = vmax.xlane.f32.xlu0 %v1652_v50 }
 0x344   : > { %2794 = vrot.lane.b32.xlu1 %v2793_v58, %s3171_s25 }
 0x34b   : > { %2789 = vrot.lane.b32.xlu2 %v2793_v58, %s3172_s27 }
 0x34f   : > { %2799 = vrot.lane.b32.xlu0 %v2793_v58, %s3173_s21 }
 0x37f   : > { %v1657_v15 = vpop.xlane.xlu2 %1656 }
 0x380   : > { %v1667_v27 = vsub.f32 %v3709_v28, %v1657_v15 }
 0x382   : > { %v1681_v29 = vmul.f32 1.442695, %v1667_v27 }
 0x386   : > { %v1639_v60 = vpop.xlane.xlu1 %1638 }
 0x387   : > { %v1661_v62 = vsub.f32 %v1628_v3, %v1639_v60  ;;  %v1660_v2 = vpop.xlane.xlu0 %1659 }
 0x388   : > { %v1668_v46 = vsub.f32 %v3718_v61, %v1660_v2 }
 0x389   : > { %v1669_v4 = vmul.f32 1.442695, %v1661_v62 }
 0x38a   : > { %v1683_v28 = vmul.f32 1.442695, %v1668_v46 }
 0x38b   : > { %2815 = vpow2.f32 %v1669_v4 }
 0x38f   : > { %v1642_v5 = vpop.xlane.xlu0 %1641 }
 0x390   : > { %v1662_v17 = vsub.f32 %v1629_v21, %v1642_v5 }
 0x391   : > { %v3747_v6 = vpop.eup %2815 }
 0x392   : > { %v1671_v7 = vmul.f32 1.442695, %v1662_v17  ;;  %v1685_v8 = vsel %vm1636_vm10, %v3747_v6, 0.0 }
 0x393   : > { %1686 = vadd.xlane.f32.xlu2 %v1685_v8 }
 0x394   : > { %2817 = vpow2.f32 %v1671_v7 }
 0x396   : > { %v1645_v9 = vpop.xlane.xlu1 %1644 }
 0x397   : > { %v1663_v23 = vsub.f32 %v1630_v39, %v1645_v9 }
 0x399   : > { %v1673_v0 = vmul.f32 1.442695, %v1663_v23 }
 0x39a   : > { %v3751_v11 = vpop.eup %2817 }
 0x39b   : > { %2819 = vpow2.f32 %v1673_v0  ;;  %v1688_v13 = vsel %vm1636_vm10, %v3751_v11, 0.0 }
 0x39c   : > { %1689 = vadd.xlane.f32.xlu0 %v1688_v13 }
 0x39e   : > { %v1648_v10 = vpop.xlane.xlu1 %1647 }
 0x39f   : > { %v1664_v16 = vsub.f32 %v1631_v43, %v1648_v10 }
 0x3a1   : > { %v3755_v18 = vpop.eup %2819  ;;  %v1675_v38 = vmul.f32 1.442695, %v1664_v16 }
 0x3a2   : > { %v1691_v35 = vsel %vm1636_vm10, %v3755_v18, 0.0 }
 0x3a3   : > { %2821 = vpow2.f32 %v1675_v38  ;;  %1692 = vadd.xlane.f32.xlu2 %v1691_v35 }
 0x3a6   : > { %v1651_v20 = vpop.xlane.xlu2 %1650 }
 0x3a7   : > { %v1665_v22 = vsub.f32 %v1632_v41, %v1651_v20 }
 0x3a9   : > { %v3759_v24 = vpop.eup %2821  ;;  %v1677_v40 = vmul.f32 1.442695, %v1665_v22 }
 0x3aa   : > { %v1694_v52 = vsel %vm1636_vm10, %v3759_v24, 0.0 }
 0x3ab   : > { %2823 = vpow2.f32 %v1677_v40  ;;  %1695 = vadd.xlane.f32.xlu2 %v1694_v52 }
 0x3ac   : > { %2825 = vpow2.f32 %v1681_v29 }
 0x3ae   : > { %v1654_v51 = vpop.xlane.xlu0 %1653  ;;  %v2790_v30 = vpop.permute.xlu2 %2789 }
 0x3af   : > { %v1666_v31 = vsub.f32 %v1633_v26, %v1654_v51  ;;  %v2792_v43 = vunpack.i.h.bf16 %v2790_v30  ;;  %v2791_v36 = vunpack.i.l.bf16 %v2790_v30 }
 0x3b1   : > { %v3765_v3 = vpop.eup %2823  ;;  %v1679_v12 = vmul.f32 1.442695, %v1666_v31  ;;  %v1267_v48 = vrot.slane %v2792_v43, 4  ;;  %v1323_v26 = vrot.slane %v2791_v36, 4 }
 0x3b2   : > { %v1697_v32 = vsel %vm1636_vm10, %v3765_v3, 0.0  ;;  %v3769_v34 = vpop.eup %2825 }
 0x3b3   : > { %2827 = vpow2.f32 %v1679_v12  ;;  %1698 = vadd.xlane.f32.xlu1 %v1697_v32  ;;  %v1703_v39 = vsel %vm1636_vm10, %v3769_v34, 0.0 }
 0x3b4   : > { %2829 = vpow2.f32 %v1683_v28 }
 0x3b6   : > { %v2795_v33 = vpop.permute.xlu1 %2794 }
 0x3b7   : > { %v2797_v21 = vunpack.i.h.bf16 %v2795_v33  ;;  %v2796_v1 = vunpack.i.l.bf16 %v2795_v33 }
 0x3b9   : > { %v3771_v25 = vpop.eup %2827  ;;  %v1253_v42 = vrot.slane %v2797_v21, 4  ;;  %v1309_v37 = vrot.slane %v2796_v1, 4  ;;  %v1256_v47 = vsel %vm773_vm7, %v2797_v21, %v1255_v19  ;;  %v1312_v55 = vsel %vm773_vm7, %v2796_v1, %v1311_v45 }
 0x3ba   : > { %v1700_v61 = vsel %vm1636_vm10, %v3771_v25, 0.0  ;;  %v3779_v44 = vpop.eup %2829  ;;  %v1264_v50 = vperm.slane %v1256_v47, %v3465_v49  ;;  %v1320_v60 = vperm.slane %v1312_v55, %v3465_v49 }
 0x3bb   : > { %1701 = vadd.xlane.f32.xlu0 %v1700_v61  ;;  %1704 = vadd.xlane.f32.xlu1 %v1703_v39  ;;  %v1254_v41 = vsel %vm773_vm7, %v1253_v42, %v3740_v59  ;;  %v1310_v56 = vsel %vm773_vm7, %v1309_v37, %v3738_v57  ;;  %v1706_v54 = vsel %vm1636_vm10, %v3779_v44, 0.0 }
 0x3bc   : > { %v1260_v58 = vperm.slane %v1254_v41, %v3465_v49  ;;  %v1316_v59 = vperm.slane %v1310_v56, %v3465_v49  ;;  %v1291_v7 = vrot.slane %v1264_v50, 4  ;;  %v1347_v0 = vrot.slane %v1320_v60, 4 }
 0x3be   : > { %v1279_v23 = vrot.slane %v1260_v58, 4  ;;  %v1335_v20 = vrot.slane %v1316_v59, 4 }
 0x3c1   : > { %v2800_v53 = vpop.permute.xlu0 %2799 }
 0x3c2   : > { %v2802_v62 = vunpack.i.h.bf16 %v2800_v53  ;;  %v2801_v2 = vunpack.i.l.bf16 %v2800_v53 }
 0x3c3   : > { %1707 = vadd.xlane.f32.xlu0 %v1706_v54 }
 0x3c4   : > { %v1265_v4 = vrot.slane %v2802_v62, 4  ;;  %v1268_v57 = vsel %vm773_vm7, %v2802_v62, %v1267_v48  ;;  %v1321_v5 = vrot.slane %v2801_v2, 4  ;;  %v1324_v17 = vsel %vm773_vm7, %v2801_v2, %v1323_v26 }
 0x3c5   : > { %v1276_v8 = vperm.slane %v1268_v57, %v3465_v49  ;;  %v1332_v9 = vperm.slane %v1324_v17, %v3465_v49 }
 0x3c6   : > { %v1266_v13 = vsel %vm773_vm7, %v1265_v4, %v2792_v43  ;;  %v1322_v15 = vsel %vm773_vm7, %v1321_v5, %v2791_v36 }
 0x3c7   : > { %v1272_v10 = vperm.slane %v1266_v13, %v3465_v49  ;;  %v1289_v16 = vrot.slane %v1276_v8, 4  ;;  %v1292_v38 = vsel %vm773_vm7, %v1276_v8, %v1291_v7  ;;  %v1328_v35 = vperm.slane %v1322_v15, %v3465_v49 }
 0x3c8   : > { %v1300_v22 = vperm.slane %v1292_v38, %v3472_v63  ;;  %v1345_v27 = vrot.slane %v1332_v9, 4  ;;  %v1348_v40 = vsel %vm773_vm7, %v1332_v9, %v1347_v0 }
 0x3c9   : > { %v1277_v52 = vrot.slane %v1272_v10, 4  ;;  %v1280_v29 = vsel %vm773_vm7, %v1272_v10, %v1279_v23  ;;  %v1290_v51 = vsel %vm773_vm7, %v1289_v16, %v1264_v50  ;;  %v1333_v31 = vrot.slane %v1328_v35, 4 }
 0x3ca   : > { %v1288_v46 = vperm.slane %v1280_v29, %v3472_v63  ;;  %v1296_v12 = vperm.slane %v1290_v51, %v3472_v63  ;;  %v1307_v32 = vrot.slane %v1300_v22, 4  ;;  %v1336_v28 = vsel %vm773_vm7, %v1328_v35, %v1335_v20 }
 0x3cb   : > { %v1278_v33 = vsel %vm773_vm7, %v1277_v52, %v1260_v58  ;;  %v1334_v21 = vsel %vm773_vm7, %v1333_v31, %v1316_v59  ;;  %v1344_v1 = vperm.slane %v1336_v28, %v3472_v63  ;;  %v1346_v30 = vsel %vm773_vm7, %v1345_v27, %v1320_v60 }
 0x3cc   : > { %v1284_v61 = vperm.slane %v1278_v33, %v3472_v63  ;;  %v1303_v39 = vrot.slane %v1288_v46, 4  ;;  %v1305_v42 = vrot.slane %v1296_v12, 4  ;;  %v1308_v19 = vsel %vm773_vm7, 0.0, %v1307_v32 }
 0x3cd   : > { %v1340_v37 = vperm.slane %v1334_v21, %v3472_v63  ;;  %v1352_v43 = vperm.slane %v1346_v30, %v3472_v63  ;;  %v1356_v36 = vperm.slane %v1348_v40, %v3472_v63  ;;  %v1359_v45 = vrot.slane %v1344_v1, 4 }
 0x3ce   : > { %v1304_v47 = vsel %vm773_vm7, 0.0, %v1303_v39  ;;  %v1381_v41 = vrot.slane %v1308_v19, 4  ;;  %v1301_v55 = vrot.slane %v1284_v61, 4  ;;  %v1306_v56 = vsel %vm773_vm7, 0.0, %v1305_v42 }
 0x3cf   : > { %v1360_v48 = vsel %vm773_vm7, 0.0, %v1359_v45  ;;  %v1361_v26 = vrot.slane %v1352_v43, 4  ;;  %v1363_v50 = vrot.slane %v1356_v36, 4  ;;  %v1357_v53 = vrot.slane %v1340_v37, 4 }
 0x3d0   : > { %v1424_v54 = vrot.slane %v1360_v48, 4  ;;  %v1419_v58 = vsel %vm773_vm7, %v1359_v45, %v1340_v37  ;;  %v1302_v60 = vsel %vm773_vm7, 0.0, %v1301_v55  ;;  %v1365_v62 = vsel %vm773_vm7, %v1303_v39, %v1284_v61 }
 0x3d1   : > { %v1364_v2 = vsel %vm773_vm7, 0.0, %v1363_v50  ;;  %v1430_v59 = vsel %vm773_vm7, %v1363_v50, %v1352_v43  ;;  %v1358_v4 = vsel %vm773_vm7, 0.0, %v1357_v53  ;;  %v1362_v57 = vsel %vm773_vm7, 0.0, %v1361_v26 }
 0x3d2   : > { %v1435_v5 = vrot.slane %v1364_v2, 4  ;;  %v1423_v17 = vperm.slane %v1419_v58, %v3465_v49  ;;  %v1425_v7 = vsel %vm773_vm7, %v1424_v54, %v1358_v4  ;;  %v1434_v8 = vperm.slane %v1430_v59, %v3465_v49 }
 0x3d3   : > { %v1429_v9 = vperm.slane %v1425_v7, %v3465_v49  ;;  %v1369_v23 = vperm.slane %v1365_v62, %v3465_v49  ;;  %v1370_v0 = vrot.slane %v1304_v47, 4  ;;  %v1376_v13 = vsel %vm773_vm7, %v1307_v32, %v1296_v12 }
 0x3d4   : > { %v1436_v15 = vsel %vm773_vm7, %v1435_v5, %v1362_v57  ;;  %v1443_v10 = vrot.slane %v1423_v17, 4  ;;  %v1455_v16 = vrot.slane %v1434_v8, 4  ;;  %v1380_v38 = vperm.slane %v1376_v13, %v3465_v49 }
 0x3d5   : > { %v1440_v35 = vperm.slane %v1436_v15, %v3465_v49  ;;  %v1441_v20 = vrot.slane %v1429_v9, 4  ;;  %v1371_v22 = vsel %vm773_vm7, %v1370_v0, %v1302_v60  ;;  %v1382_v27 = vsel %vm773_vm7, %v1381_v41, %v1306_v56 }
 0x3d6   : > { %v1444_v40 = vsel %vm773_vm7, %v1429_v9, %v1443_v10  ;;  %v1375_v52 = vperm.slane %v1371_v22, %v3465_v49  ;;  %v1386_v29 = vperm.slane %v1382_v27, %v3465_v49  ;;  %v1389_v51 = vrot.slane %v1369_v23, 4 }
 0x3d7   : > { %v1452_v31 = vperm.slane %v1444_v40, %v3472_v63  ;;  %v1456_v46 = vsel %vm773_vm7, %v1440_v35, %v1455_v16  ;;  %v1442_v12 = vsel %vm773_vm7, %v1441_v20, %v1423_v17  ;;  %v1453_v32 = vrot.slane %v1440_v35, 4 }
 0x3d8   : > { %v1464_v28 = vperm.slane %v1456_v46, %v3472_v63  ;;  %v1448_v33 = vperm.slane %v1442_v12, %v3472_v63  ;;  %v1390_v21 = vsel %vm773_vm7, %v1375_v52, %v1389_v51  ;;  %v1401_v1 = vrot.slane %v1380_v38, 4 }
 0x3d9   : > { %v1454_v30 = vsel %vm773_vm7, %v1453_v32, %v1434_v8  ;;  %v1398_v61 = vperm.slane %v1390_v21, %v3472_v63  ;;  %v1471_v39 = vrot.slane %v1452_v31, 4  ;;  %v1387_v42 = vrot.slane %v1375_v52, 4 }
 0x3da   : > { %v1469_v19 = vrot.slane %v1464_v28, 4  ;;  %v1460_v37 = vperm.slane %v1454_v30, %v3472_v63  ;;  %v1402_v43 = vsel %vm773_vm7, %v1386_v29, %v1401_v1  ;;  %v1399_v41 = vrot.slane %v1386_v29, 4 }
 0x3db   : > { %v1410_v36 = vperm.slane %v1402_v43, %v3472_v63  ;;  %v1472_v45 = vsel %vm773_vm7, %v1464_v28, %v1471_v39  ;;  %v1388_v47 = vsel %vm773_vm7, %v1387_v42, %v1369_v23  ;;  %v1417_v48 = vrot.slane %v1398_v61, 4 }
 0x3dc   : > { %v1470_v55 = vsel %vm773_vm7, %v1469_v19, %v1452_v31  ;;  %v1465_v56 = vrot.slane %v1460_v37, 4  ;;  %1936 = vmatpush.msra.mxu0 %v1472_v45  ;;  %v1467_v26 = vrot.slane %v1448_v33, 4  ;;  %v1394_v53 = vperm.slane %v1388_v47, %v3472_v63 }
 0x3dd   : > { %1907 = vmatpush.msrb.mxu3 %v1470_v55  ;;  %v1415_v50 = vrot.slane %v1410_v36, 4  ;;  %v1400_v54 = vsel %vm773_vm7, %v1399_v41, %v1380_v38  ;;  %v1418_v62 = vsel %vm773_vm7, %v1410_v36, %v1417_v48 }
 0x3de   : > { %v1466_v58 = vsel %vm773_vm7, %v1465_v56, %v1448_v33  ;;  %v1406_v60 = vperm.slane %v1400_v54, %v3472_v63  ;;  %1937 = vmatpush.msra.mxu0 %v1418_v62  ;;  %v1468_v4 = vsel %vm773_vm7, %v1460_v37, %v1467_v26  ;;  %v1413_v57 = vrot.slane %v1394_v53, 4 }
 0x3df   : > { %1849 = vmatpush.msrb.mxu2 %v1466_v58  ;;  %v1416_v2 = vsel %vm773_vm7, %v1415_v50, %v1398_v61 }
 0x3e0   : > { %1908 = vmatpush.msrb.mxu3 %v1416_v2  ;;  %v1411_v59 = vrot.slane %v1406_v60, 4  ;;  %v1414_v17 = vsel %vm773_vm7, %v1406_v60, %v1413_v57 }
 0x3e2   : > { %v1412_v5 = vsel %vm773_vm7, %v1411_v59, %v1394_v53 }
 0x3e3   : > { %1850 = vmatpush.msrb.mxu2 %v1412_v5 }
 0x3e5   : > { %1878 = vmatpush.msra.mxu2 %v1468_v4 }
 0x3e7   : > { %1879 = vmatpush.msra.mxu2 %v1414_v17 }
 0x406   : > { %v1687_v7 = vpop.xlane.xlu2 %1686 }
 0x407   : > { %2831 = vrcp.f32 %v1687_v7  ;;  %v1720_v15 = vand.u32 2147483648, %v1687_v7  ;;  %v1718_v10 = vand.u32 2147483647, %v1687_v7  ;;  %vm1714_vm12 = vweird.f32 %v1687_v7 }
 0x409   : > { %v1721_v35 = vor.u32 1.1754944e-38, %v1720_v15  ;;  %vm1719_vm14 = vcmp.eq.f32.partialorder %v1718_v10, 8.507059e+37 }
 0x40d   : > { %v2832_v8 = vpop.eup %2831 }
 0x40e   : > { %v1710_v9 = vmul.f32 %v2832_v8, %v1687_v7  ;;  %vm1715_vm11 = vweird.f32 %v2832_v8 }
 0x40f   : > { %v1690_v23 = vpop.xlane.xlu0 %1689  ;;  %vm1716_vm13 = vmor %vm1714_vm12, %vm1715_vm11 }
 0x410   : > { %v1711_v0 = vsub.f32 1.0, %v1710_v9  ;;  %2833 = vrcp.f32 %v1690_v23  ;;  %v1735_v51 = vand.u32 2147483648, %v1690_v23  ;;  %v1733_v46 = vand.u32 2147483647, %v1690_v23 }
 0x411   : > { %vm1729_vm0 = vweird.f32 %v1690_v23 }
 0x412   : > { %v1712_v13 = vmul.f32 %v2832_v8, %v1711_v0  ;;  %v1736_v28 = vor.u32 1.1754944e-38, %v1735_v51  ;;  %vm1734_vm2 = vcmp.eq.f32.partialorder %v1733_v46, 8.507059e+37 }
 0x414   : > { %v1713_v16 = vadd.f32 %v2832_v8, %v1712_v13 }
 0x416   : > { %v2834_v38 = vpop.eup %2833  ;;  %v1693_v20 = vpop.xlane.xlu2 %1692  ;;  %v1717_v22 = vsel %vm1716_vm13, %v2832_v8, %v1713_v16 }
 0x417   : > { %v1725_v27 = vmul.f32 %v2834_v38, %v1690_v23  ;;  %2835 = vrcp.f32 %v1693_v20  ;;  %v1722_v40 = vsel %vm1719_vm14, %v1721_v35, %v1717_v22  ;;  %vm1730_vm15 = vweird.f32 %v2834_v38 }
 0x418   : > { %v1723_v29 = vmul.f32 %v3747_v6, %v1722_v40  ;;  %vm1731_vm1 = vmor %vm1729_vm0, %vm1730_vm15  ;;  %v1750_v39 = vand.u32 2147483648, %v1693_v20  ;;  %v1748_v19 = vand.u32 2147483647, %v1693_v20  ;;  %vm1744_vm4 = vweird.f32 %v1693_v20 }
 0x419   : > { %v1726_v52 = vsub.f32 1.0, %v1725_v27 }
 0x41a   : > { %2651 = vmatmul.msk.f32.vlgmr.msrb.gmra.mxu2 %vm1636_vm10, %v1723_v29  ;;  %v1751_v36 = vor.u32 1.1754944e-38, %v1750_v39  ;;  %vm1749_vm6 = vcmp.eq.f32.partialorder %v1748_v19, 8.507059e+37 }
 0x41b   : > { %v1727_v31 = vmul.f32 %v2834_v38, %v1726_v52 }
 0x41d   : > { %v2836_v12 = vpop.eup %2835  ;;  %v1728_v32 = vadd.f32 %v2834_v38, %v1727_v31 }
 0x41e   : > { %v1740_v33 = vmul.f32 %v2836_v12, %v1693_v20  ;;  %v1696_v21 = vpop.xlane.xlu2 %1695  ;;  %vm1745_vm3 = vweird.f32 %v2836_v12 }
 0x41f   : > { %2837 = vrcp.f32 %v1696_v21  ;;  %v1732_v1 = vsel %vm1731_vm1, %v2834_v38, %v1728_v32  ;;  %vm1746_vm5 = vmor %vm1744_vm4, %vm1745_vm3  ;;  %v1765_v26 = vand.u32 2147483648, %v1696_v21  ;;  %vm1759_vm11 = vweird.f32 %v1696_v21 }
 0x420   : > { %v1741_v30 = vsub.f32 1.0, %v1740_v33  ;;  %v1737_v61 = vsel %vm1734_vm2, %v1736_v28, %v1732_v1  ;;  %v1763_v53 = vand.u32 2147483647, %v1696_v21 }
 0x421   : > { %v1738_v6 = vmul.f32 %v3751_v11, %v1737_v61  ;;  %v1766_v59 = vor.u32 1.1754944e-38, %v1765_v26 }
 0x422   : > { %v1742_v42 = vmul.f32 %v2836_v12, %v1741_v30  ;;  %vm1764_vm13 = vcmp.eq.f32.partialorder %v1763_v53, 8.507059e+37 }
 0x423   : > { %2652 = vmatmul.msk.f32.gmra.mxu2 %vm1636_vm10, %v1738_v6 }
 0x424   : > { %v1743_v37 = vadd.f32 %v2836_v12, %v1742_v42 }
 0x425   : > { %v2838_v43 = vpop.eup %2837 }
 0x426   : > { %v1747_v45 = vsel %vm1746_vm5, %v2836_v12, %v1743_v37  ;;  %v1755_v47 = vmul.f32 %v2838_v43, %v1696_v21  ;;  %v1699_v41 = vpop.xlane.xlu1 %1698  ;;  %vm1760_vm9 = vweird.f32 %v2838_v43 }
 0x427   : > { %v1752_v55 = vsel %vm1749_vm6, %v1751_v36, %v1747_v45  ;;  %2839 = vrcp.f32 %v1699_v41  ;;  %vm1761_vm12 = vmor %vm1759_vm11, %vm1760_vm9  ;;  %v1778_v17 = vand.u32 2147483647, %v1699_v41  ;;  %vm1774_vm15 = vweird.f32 %v1699_v41 }
 0x428   : > { %v1756_v56 = vsub.f32 1.0, %v1755_v47  ;;  %v1753_v48 = vmul.f32 %v3755_v18, %v1752_v55  ;;  %v1780_v18 = vand.u32 2147483648, %v1699_v41 }
 0x429   : > { %vm1779_vm1 = vcmp.eq.f32.partialorder %v1778_v17, 8.507059e+37 }
 0x42a   : > { %v1757_v11 = vmul.f32 %v2838_v43, %v1756_v56  ;;  %v1781_v23 = vor.u32 1.1754944e-38, %v1780_v18 }
 0x42b   : > { %2653 = vmatmul.msk.f32.vlgmr.msra.gmra.mxu2 %vm1636_vm10, %v1753_v48 }
 0x42c   : > { %v1758_v50 = vadd.f32 %v2838_v43, %v1757_v11 }
 0x42d   : > { %v2840_v54 = vpop.eup %2839 }
 0x42e   : > { %v1770_v58 = vmul.f32 %v2840_v54, %v1699_v41  ;;  %v1702_v60 = vpop.xlane.xlu0 %1701  ;;  %v1705_v62 = vpop.xlane.xlu1 %1704  ;;  %v1762_v2 = vsel %vm1761_vm12, %v2838_v43, %v1758_v50  ;;  %vm1775_vm14 = vweird.f32 %v2840_v54 }
 0x42f   : > { %2841 = vrcp.f32 %v1702_v60  ;;  %v1767_v57 = vsel %vm1764_vm13, %v1766_v59, %v1762_v2  ;;  %vm1776_vm0 = vmor %vm1774_vm15, %vm1775_vm14  ;;  %v1795_v22 = vand.u32 2147483648, %v1702_v60  ;;  %v1810_v40 = vand.u32 2147483648, %v1705_v62 }
 0x430   : > { %v1771_v4 = vsub.f32 1.0, %v1770_v58  ;;  %2843 = vrcp.f32 %v1705_v62  ;;  %v1768_v7 = vmul.f32 %v3759_v24, %v1767_v57  ;;  %v1793_v52 = vand.u32 2147483647, %v1702_v60 }
 0x431   : > { %v1808_v51 = vand.u32 2147483647, %v1705_v62  ;;  %vm1789_vm4 = vweird.f32 %v1702_v60  ;;  %v1796_v12 = vor.u32 1.1754944e-38, %v1795_v22  ;;  %vm1804_vm5 = vweird.f32 %v1705_v62 }
 0x432   : > { %v1772_v5 = vmul.f32 %v2840_v54, %v1771_v4  ;;  %vm1794_vm11 = vcmp.eq.f32.partialorder %v1793_v52, 8.507059e+37 }
 0x433   : > { %2654 = vmatmul.msk.f32.gmra.mxu2 %vm1636_vm10, %v1768_v7  ;;  %vm1809_vm12 = vcmp.eq.f32.partialorder %v1808_v51, 8.507059e+37 }
 0x434   : > { %v1773_v8 = vadd.f32 %v2840_v54, %v1772_v5 }
 0x435   : > { %v2842_v9 = vpop.eup %2841 }
 0x436   : > { %v2844_v0 = vpop.eup %2843  ;;  %v1777_v13 = vsel %vm1776_vm0, %v2840_v54, %v1773_v8  ;;  %v1785_v15 = vmul.f32 %v2842_v9, %v1702_v60  ;;  %v1708_v10 = vpop.xlane.xlu0 %1707  ;;  %vm1790_vm2 = vweird.f32 %v2842_v9 }
 0x437   : > { %v1782_v16 = vsel %vm1779_vm1, %v1781_v23, %v1777_v13  ;;  %v1800_v38 = vmul.f32 %v2844_v0, %v1705_v62  ;;  %2845 = vrcp.f32 %v1708_v10  ;;  %vm1805_vm3 = vweird.f32 %v2844_v0  ;;  %vm1791_vm6 = vmor %vm1789_vm4, %vm1790_vm2 }
 0x438   : > { %v1786_v35 = vsub.f32 1.0, %v1785_v15  ;;  %v1783_v20 = vmul.f32 %v3765_v3, %v1782_v16  ;;  %vm1806_vm9 = vmor %vm1804_vm5, %vm1805_vm3  ;;  %v1811_v3 = vor.u32 1.1754944e-38, %v1810_v40  ;;  %v1825_v6 = vand.u32 2147483648, %v1708_v10 }
 0x439   : > { %v1801_v24 = vsub.f32 1.0, %v1800_v38  ;;  %v1823_v37 = vand.u32 2147483647, %v1708_v10  ;;  %vm1819_vm14 = vweird.f32 %v1708_v10 }
 0x43a   : > { %v1787_v27 = vmul.f32 %v2842_v9, %v1786_v35  ;;  %2655 = vmatmul.msk.f32.vlgmr.msrb.gmra.mxu3 %vm1636_vm10, %v1783_v20  ;;  %v1826_v36 = vor.u32 1.1754944e-38, %v1825_v6 }
 0x43b   : > { %v1802_v29 = vmul.f32 %v2844_v0, %v1801_v24  ;;  %vm1824_vm0 = vcmp.eq.f32.partialorder %v1823_v37, 8.507059e+37 }
 0x43c   : > { %v1788_v31 = vadd.f32 %v2842_v9, %v1787_v27 }
 0x43d   : > { %v2846_v46 = vpop.eup %2845  ;;  %v1803_v32 = vadd.f32 %v2844_v0, %v1802_v29 }
 0x43e   : > { %v1815_v28 = vmul.f32 %v2846_v46, %v1708_v10  ;;  %v1792_v33 = vsel %vm1791_vm6, %v2842_v9, %v1788_v31  ;;  %vm1820_vm13 = vweird.f32 %v2846_v46 }
 0x43f   : > { %v1807_v21 = vsel %vm1806_vm9, %v2844_v0, %v1803_v32  ;;  %v1797_v1 = vsel %vm1794_vm11, %v1796_v12, %v1792_v33  ;;  %vm1821_vm15 = vmor %vm1819_vm14, %vm1820_vm13 }
 0x440   : > { %v1812_v30 = vsel %vm1809_vm12, %v1811_v3, %v1807_v21  ;;  %v1816_v61 = vsub.f32 1.0, %v1815_v28  ;;  %v1798_v39 = vmul.f32 %v3771_v25, %v1797_v1 }
 0x441   : > { %v1813_v42 = vmul.f32 %v3769_v34, %v1812_v30 }
 0x442   : > { %v1817_v19 = vmul.f32 %v2846_v46, %v1816_v61  ;;  %2656 = vmatmul.msk.f32.gmra.mxu3 %vm1636_vm10, %v1798_v39 }
 0x443   : > { %2657 = vmatmul.msk.f32.vlgmr.msra.gmra.mxu0 %vm1636_vm10, %v1813_v42 }
 0x444   : > { %v1818_v43 = vadd.f32 %v2846_v46, %v1817_v19 }
 0x446   : > { %v1822_v45 = vsel %vm1821_vm15, %v2846_v46, %v1818_v43 }
 0x447   : > { %v1827_v47 = vsel %vm1824_vm0, %v1826_v36, %v1822_v45 }
 0x448   : > { %v1828_v41 = vmul.f32 %v3779_v44, %v1827_v47 }
 0x44b   : > { %2658 = vmatmul.msk.f32.gmra.mxu0 %vm1636_vm10, %v1828_v41  ;;  %vm2194_vm10 = vcmask 785408  }
 0x49d   : > { %v1852_v25 = vpop.f32.mrf.mxu2 }
 0x49e   : > { %v1947_v56 = vrot.slane %v1852_v25, 4 }
 0x4a6   : > { %v1855_v34 = vpop.f32.mrf.mxu2 }
 0x4a7   : > { %v2003_v7 = vrot.slane %v1855_v34, 4 }
 0x4ae   : > { %v1881_v55 = vpop.f32.mrf.mxu2 }
 0x4af   : > { %v1959_v50 = vrot.slane %v1881_v55, 4 }
 0x4b6   : > { %v1884_v8 = vpop.f32.mrf.mxu2 }
 0x4b7   : > { %v2015_v22 = vrot.slane %v1884_v8, 4 }
 0x4bd   : > { %v1910_v48 = vpop.f32.mrf.mxu3 }
 0x4be   : > { %v1945_v11 = vrot.slane %v1910_v48, 4  ;;  %v1948_v26 = vsel %vm773_vm7, %v1910_v48, %v1947_v56 }
 0x4bf   : > { %v1956_v53 = vperm.slane %v1948_v26, %v3465_v49 }
 0x4c0   : > { %v1946_v54 = vsel %vm773_vm7, %v1945_v11, %v1852_v25  ;;  %v1939_v58 = vpop.f32.mrf.mxu0 }
 0x4c1   : > { %v1952_v60 = vperm.slane %v1946_v54, %v3465_v49  ;;  %v1983_v62 = vrot.slane %v1956_v53, 4  ;;  %v1957_v44 = vrot.slane %v1939_v58, 4  ;;  %v1960_v2 = vsel %vm773_vm7, %v1939_v58, %v1959_v50 }
 0x4c2   : > { %v1968_v59 = vperm.slane %v1960_v2, %v3465_v49 }
 0x4c3   : > { %v1971_v4 = vrot.slane %v1952_v60, 4  ;;  %v1958_v18 = vsel %vm773_vm7, %v1957_v44, %v1881_v55 }
 0x4c4   : > { %v1964_v57 = vperm.slane %v1958_v18, %v3465_v49  ;;  %v1981_v5 = vrot.slane %v1968_v59, 4  ;;  %v1984_v17 = vsel %vm773_vm7, %v1968_v59, %v1983_v62 }
 0x4c5   : > { %v1992_v9 = vperm.slane %v1984_v17, %v3472_v63  ;;  %v1913_v23 = vpop.f32.mrf.mxu3 }
 0x4c6   : > { %v1969_v0 = vrot.slane %v1964_v57, 4  ;;  %v1972_v13 = vsel %vm773_vm7, %v1964_v57, %v1971_v4  ;;  %v1982_v15 = vsel %vm773_vm7, %v1981_v5, %v1956_v53  ;;  %v2001_v10 = vrot.slane %v1913_v23, 4 }
 0x4c7   : > { %v1980_v16 = vperm.slane %v1972_v13, %v3472_v63  ;;  %v1988_v38 = vperm.slane %v1982_v15, %v3472_v63  ;;  %v1999_v35 = vrot.slane %v1992_v9, 4  ;;  %v2004_v20 = vsel %vm773_vm7, %v1913_v23, %v2003_v7 }
 0x4c8   : > { %v1970_v24 = vsel %vm773_vm7, %v1969_v0, %v1952_v60  ;;  %v2002_v27 = vsel %vm773_vm7, %v2001_v10, %v1855_v34  ;;  %v2012_v40 = vperm.slane %v2004_v20, %v3465_v49  ;;  %v1942_v46 = vpop.f32.mrf.mxu0 }
 0x4c9   : > { %v1976_v52 = vperm.slane %v1970_v24, %v3472_v63  ;;  %v1995_v29 = vrot.slane %v1980_v16, 4  ;;  %v1997_v51 = vrot.slane %v1988_v38, 4  ;;  %v2000_v31 = vsel %vm773_vm7, 0.0, %v1999_v35 }
 0x4ca   : > { %v2068_v12 = vsel %vm773_vm7, %v1999_v35, %v1988_v38  ;;  %v2073_v32 = vrot.slane %v2000_v31, 4  ;;  %v2008_v3 = vperm.slane %v2002_v27, %v3465_v49  ;;  %v2039_v28 = vrot.slane %v2012_v40, 4 }
 0x4cb   : > { %v1993_v33 = vrot.slane %v1976_v52, 4  ;;  %v1996_v21 = vsel %vm773_vm7, 0.0, %v1995_v29  ;;  %v1998_v1 = vsel %vm773_vm7, 0.0, %v1997_v51  ;;  %v2072_v30 = vperm.slane %v2068_v12, %v3465_v49 }
 0x4cc   : > { %v2062_v61 = vrot.slane %v1996_v21, 4  ;;  %v2027_v39 = vrot.slane %v2008_v3, 4  ;;  %v2013_v6 = vrot.slane %v1942_v46, 4  ;;  %v2016_v42 = vsel %vm773_vm7, %v1942_v46, %v2015_v22 }
 0x4cd   : > { %v2024_v19 = vperm.slane %v2016_v42, %v3465_v49  ;;  %v1994_v37 = vsel %vm773_vm7, 0.0, %v1993_v33  ;;  %v2057_v43 = vsel %vm773_vm7, %v1995_v29, %v1976_v52  ;;  %v2074_v36 = vsel %vm773_vm7, %v2073_v32, %v1998_v1 }
 0x4ce   : > { %v2014_v45 = vsel %vm773_vm7, %v2013_v6, %v1884_v8  ;;  %v2061_v47 = vperm.slane %v2057_v43, %v3465_v49  ;;  %v2063_v41 = vsel %vm773_vm7, %v2062_v61, %v1994_v37  ;;  %v2078_v25 = vperm.slane %v2074_v36, %v3465_v49 }
 0x4cf   : > { %v2020_v34 = vperm.slane %v2014_v45, %v3465_v49  ;;  %v2037_v55 = vrot.slane %v2024_v19, 4  ;;  %v2040_v56 = vsel %vm773_vm7, %v2024_v19, %v2039_v28  ;;  %v2067_v48 = vperm.slane %v2063_v41, %v3465_v49 }
 0x4d0   : > { %v2048_v11 = vperm.slane %v2040_v56, %v3472_v63  ;;  %v2081_v26 = vrot.slane %v2061_v47, 4  ;;  %v2093_v50 = vrot.slane %v2072_v30, 4  ;;  %v2091_v53 = vrot.slane %v2078_v25, 4 }
 0x4d1   : > { %v2025_v54 = vrot.slane %v2020_v34, 4  ;;  %v2028_v58 = vsel %vm773_vm7, %v2020_v34, %v2027_v39  ;;  %v2038_v60 = vsel %vm773_vm7, %v2037_v55, %v2012_v40  ;;  %v2079_v62 = vrot.slane %v2067_v48, 4 }
 0x4d2   : > { %v2036_v44 = vperm.slane %v2028_v58, %v3472_v63  ;;  %v2044_v2 = vperm.slane %v2038_v60, %v3472_v63  ;;  %v2055_v59 = vrot.slane %v2048_v11, 4  ;;  %v2082_v4 = vsel %vm773_vm7, %v2067_v48, %v2081_v26  ;;  %v2211_v58 = vld [vmem:[#allocation12 + $0x70] sm:$0xff]  ;;  %v2209_v60 = vld [vmem:[#allocation12 + $0x60] sm:$0xff] }
 0x4d3   : > { %v2026_v18 = vsel %vm773_vm7, %v2025_v54, %v2008_v3  ;;  %v2090_v57 = vperm.slane %v2082_v4, %v3472_v63  ;;  %v2094_v5 = vsel %vm773_vm7, %v2078_v25, %v2093_v50  ;;  %v2080_v17 = vsel %vm773_vm7, %v2079_v62, %v2061_v47  ;;  %v2212_v54 = vld [vmem:[#allocation12 + $0x78] sm:$0xff] }
 0x4d4   : > { %v2032_v7 = vperm.slane %v2026_v18, %v3472_v63  ;;  %v2051_v8 = vrot.slane %v2036_v44, 4  ;;  %v2053_v9 = vrot.slane %v2044_v2, 4  ;;  %v2056_v23 = vsel %vm773_vm7, 0.0, %v2055_v59  ;;  %2217 = vmatpush.msrb.mxu1 %v2212_v54  ;;  %v2208_v62 = vld [vmem:[#allocation12 + $0x58] sm:$0xff]  ;;  %v2207_v44 = vld [vmem:[#allocation12 + $0x50] sm:$0xff]  ;;  %v2306_v54 = vld [vmem:[#allocation13 + $0x60] sm:$0xff] }
 0x4d5   : > { %v2122_v0 = vsel %vm773_vm7, %v2055_v59, %v2044_v2  ;;  %v2127_v13 = vrot.slane %v2056_v23, 4  ;;  %v2102_v15 = vperm.slane %v2094_v5, %v3472_v63  ;;  %v2109_v10 = vrot.slane %v2090_v57, 4  ;;  %v2206_v2 = vld [vmem:[#allocation12 + $0x48] sm:$0xff]  ;;  %v2205_v59 = vld [vmem:[#allocation12 + $0x40] sm:$0xff]  ;;  %v2204_v4 = vld [vmem:[#allocation12 + $0x38] sm:$0xff] }
 0x4d6   : > { %v2049_v16 = vrot.slane %v2032_v7, 4  ;;  %v2052_v38 = vsel %vm773_vm7, 0.0, %v2051_v8  ;;  %v2054_v35 = vsel %vm773_vm7, 0.0, %v2053_v9  ;;  %v2086_v20 = vperm.slane %v2080_v17, %v3472_v63  ;;  %2218 = vmatpush.msrb.mxu1 %v2211_v58  ;;  %v2203_v18 = vld [vmem:[#allocation12 + $0x30] sm:$0xff]  ;;  %v2201_v5 = vld [vmem:[#allocation12 + $0x20] sm:$0xff]  ;;  %v2200_v17 = vld [vmem:[#allocation12 + $0x18] sm:$0xff] }
 0x4d7   : > { %v2116_v22 = vrot.slane %v2052_v38, 4  ;;  %v2107_v24 = vrot.slane %v2102_v15, 4  ;;  %v2110_v27 = vsel %vm773_vm7, %v2102_v15, %v2109_v10  ;;  %v2092_v40 = vsel %vm773_vm7, %v2091_v53, %v2072_v30  ;;  %v2197_v9 = vld [vmem:[#allocation12] sm:$0xff]  ;;  %v2307_v58 = vld [vmem:[#allocation13 + $0x68] sm:$0xff] }
 0x4d8   : > { %2183 = vrot.lane.b32.xlu0 %v2110_v27, %s3172_s27  ;;  %v2098_v52 = vperm.slane %v2092_v40, %v3472_v63  ;;  %v2105_v29 = vrot.slane %v2086_v20, 4  ;;  %v2050_v51 = vsel %vm773_vm7, 0.0, %v2049_v16  ;;  %v2111_v31 = vsel %vm773_vm7, %v2051_v8, %v2032_v7  ;;  %v2199_v7 = vld [vmem:[#allocation12 + $0x10] sm:$0xff]  ;;  %v2198_v8 = vld [vmem:[#allocation12 + $0x8] sm:$0xff]  ;;  %v2805_v40 = vld [vmem:[%s4052_s7] ss:$0 sm:$0xff] }
 0x4d9   : > { %v2108_v46 = vsel %vm773_vm7, %v2107_v24, %v2090_v57  ;;  %v2115_v12 = vperm.slane %v2111_v31, %v3465_v49  ;;  %v2117_v32 = vsel %vm773_vm7, %v2116_v22, %v2050_v51  ;;  %v2126_v3 = vperm.slane %v2122_v0, %v3465_v49  ;;  %v2202_v57 = vld [vmem:[#allocation12 + $0x28] sm:$0xff] }
 0x4da   : > { %2175 = vrot.lane.b32.xlu2 %v2108_v46, %s3171_s25  ;;  %v2103_v28 = vrot.slane %v2098_v52, 4  ;;  %v2106_v33 = vsel %vm773_vm7, %v2098_v52, %v2105_v29  ;;  %v2121_v21 = vperm.slane %v2117_v32, %v3465_v49  ;;  %v2128_v1 = vsel %vm773_vm7, %v2127_v13, %v2054_v35  ;;  %v2851_v51 = vld [vmem:[%s3399_s11] sm:$0xff]  ;;  %v2852_v32 = vld [vmem:[%s3399_s11 + $0x8] sm:$0xff] }
 0x4db   : > { %2167 = vrot.lane.b32.xlu1 %v2106_v33, %s3173_s21  ;;  %v2132_v30 = vperm.slane %v2128_v1, %v3465_v49  ;;  %v2135_v61 = vrot.slane %v2115_v12, 4  ;;  %v2147_v39 = vrot.slane %v2126_v3, 4  ;;  %v2325_v33 = vld [vmem:[#allocation13 + $0xf8] sm:$0xff]  ;;  %v2323_v1 = vld [vmem:[#allocation13 + $0xe8] sm:$0xff] }
 0x4dc   : > { %v2133_v6 = vrot.slane %v2121_v21, 4  ;;  %v2104_v42 = vsel %vm773_vm7, %v2103_v28, %v2086_v20  ;;  %v2324_v28 = vld [vmem:[#allocation13 + $0xf0] sm:$0xff]  ;;  %2355 = vmatpush.msra.mxu3 %v2325_v33  ;;  %v2391_v33 = vld [vmem:[#allocation15 + $0x48] sm:$0xff] }
 0x4dd   : > { %v2136_v19 = vsel %vm773_vm7, %v2121_v21, %v2135_v61  ;;  %v2148_v37 = vsel %vm773_vm7, %v2132_v30, %v2147_v39  ;;  %v2145_v43 = vrot.slane %v2132_v30, 4  ;;  %v2322_v21 = vld [vmem:[#allocation13 + $0xe0] sm:$0xff]  ;;  %2332 = vmatpush.msrb.mxu2 %v2324_v28 }
 0x4de   : > { %v2144_v36 = vperm.slane %v2136_v19, %v3472_v63  ;;  %v2156_v45 = vperm.slane %v2148_v37, %v3472_v63  ;;  %v2134_v47 = vsel %vm773_vm7, %v2133_v6, %v2115_v12  ;;  %2356 = vmatpush.msra.mxu3 %v2323_v1  ;;  %v2390_v1 = vld [vmem:[#allocation15 + $0x40] sm:$0xff] }
 0x4df   : > { %v2140_v41 = vperm.slane %v2134_v47, %v3472_v63  ;;  %v2146_v49 = vsel %vm773_vm7, %v2145_v43, %v2126_v3  ;;  %2333 = vmatpush.msrb.mxu2 %v2322_v21  ;;  %v2318_v47 = vld [vmem:[#allocation13 + $0xc0] sm:$0xff] }
 0x4e0   : > { %v2163_v25 = vrot.slane %v2144_v36, 4  ;;  %v2161_v34 = vrot.slane %v2156_v45, 4  ;;  %v2152_v55 = vperm.slane %v2146_v49, %v3472_v63  ;;  %v2210_v63 = vld [vmem:[#allocation12 + $0x68] sm:$0xff]  ;;  %v2316_v49 = vld [vmem:[#allocation13 + $0xb0] sm:$0xff] }
 0x4e1   : > { %v2159_v56 = vrot.slane %v2140_v41, 4  ;;  %2219 = vmatpush.msrb.mxu1 %v2210_v63  ;;  %v2304_v63 = vld [vmem:[#allocation13 + $0x50] sm:$0xff] }
 0x4e2   : > { %v2164_v48 = vsel %vm773_vm7, %v2156_v45, %v2163_v25  ;;  %v2162_v11 = vsel %vm773_vm7, %v2161_v34, %v2144_v36  ;;  %v2157_v26 = vrot.slane %v2152_v55, 4  ;;  %v2320_v36 = vld [vmem:[#allocation13 + $0xd0] sm:$0xff]  ;;  %v2321_v45 = vld [vmem:[#allocation13 + $0xd8] sm:$0xff]  ;;  %v2314_v34 = vld [vmem:[#allocation13 + $0xa0] sm:$0xff] }
 0x4e3   : > { %2185 = vrot.lane.b32.xlu2 %v2164_v48, %s3172_s27  ;;  %2177 = vrot.lane.b32.xlu0 %v2162_v11, %s3171_s25  ;;  %v2160_v50 = vsel %vm773_vm7, %v2152_v55, %v2159_v56  ;;  %v2317_v25 = vld [vmem:[#allocation13 + $0xb8] sm:$0xff]  ;;  %v2315_v55 = vld [vmem:[#allocation13 + $0xa8] sm:$0xff]  ;;  %v2312_v56 = vld [vmem:[#allocation13 + $0x90] sm:$0xff]  ;;  %s4088_s27 = sld [smem:[#allocation29_spill]] }
 0x4e4   : > { %2169 = vrot.lane.b32.xlu1 %v2160_v50, %s3173_s21  ;;  %v2158_v53 = vsel %vm773_vm7, %v2157_v26, %v2140_v41  ;;  %2220 = vmatpush.msrb.mxu1 %v2209_v60  ;;  %vm2191_vm7 = vcmask 523264   ;;  %v2319_v41 = vld [vmem:[#allocation13 + $0xc8] sm:$0xff]  ;;  %v2313_v48 = vld [vmem:[#allocation13 + $0x98] sm:$0xff]  ;;  %v2310_v11 = vld [vmem:[#allocation13 + $0x80] sm:$0xff]  ;;  %s2665_s21 = sshll.u32 %s3280_s23, 4  ;;  %s2469_s23 = scalar_lea.sflag [#allocation6], %s3393_s16 }
 0x4e5   : > { %2334 = vmatpush.msrb.mxu2 %v2320_v36  ;;  %2357 = vmatpush.msra.mxu3 %v2321_v45  ;;  %v2311_v26 = vld [vmem:[#allocation13 + $0x88] sm:$0xff]  ;;  %v2308_v50 = vld [vmem:[#allocation13 + $0x70] sm:$0xff]  ;;  %v2305_v60 = vld [vmem:[#allocation13 + $0x58] sm:$0xff]  ;;  %s2480_s30 = scalar_lea.hbm %s4089_s15, %s2665_s21 }
 0x4e6   : > { %2221 = vmatpush.msrb.mxu1 %v2208_v62  ;;  %v2302_v62 = vld [vmem:[#allocation13 + $0x40] sm:$0xff]  ;;  %v2806_v36 = vld [vmem:[%s4053_s8] ss:$0 sm:$0xff]  ;;  %s2483_s29 = sshll.u32 %s2480_s30, 4  ;;  %s2484_s29 = int_to_ptr.hbm [resolvable:$true] %s2483_s29 }
 0x4e7   : > { %2335 = vmatpush.msrb.mxu2 %v2318_v47  ;;  %2358 = vmatpush.msra.mxu3 %v2319_v41  ;;  %v2388_v47 = vld [vmem:[#allocation15 + $0x30] sm:$0xff]  ;;  %s3089_s10 = sshra.s32 %s2484_s29, 4  ;;  %s3090_s10 = int_to_ptr.hbm [resolvable:$true] %s3089_s10 }
 0x4e8   : > { %2222 = vmatpush.msrb.mxu1 %v2207_v44  ;;  %v2303_v44 = vld [vmem:[#allocation13 + $0x48] sm:$0xff]  ;;  %v2404_v41 = vld [vmem:[#allocation15 + $0xb0] sm:$0xff]  ;;  %s3091_s6 = scalar_lea.hbm %s3090_s10, 16  ;;  %p3096_p12 = scmp.lt.s32.totalorder %s3090_s10, %s4089_s15 }
 0x4e9   : > { %2336 = vmatpush.msrb.mxu2 %v2316_v49  ;;  %2359 = vmatpush.msra.mxu3 %v2317_v25  ;;  %p3092_p1 = scmp.ne.s32.totalorder %s3090_s10, %s3091_s6  ;;  %p3097_p7 = scmp.lt.s32.totalorder %s3095_s24, %s3091_s6 }
 0x4ea   : > { %2223 = vmatpush.msrb.mxu1 %v2206_v2  ;;  %v2300_v2 = vld [vmem:[#allocation13 + $0x30] sm:$0xff] }
 0x4eb   : > { %2337 = vmatpush.msrb.mxu2 %v2314_v34  ;;  %2360 = vmatpush.msra.mxu3 %v2315_v55  ;;  %v2807_v34 = vld [vmem:[%s4054_s9] ss:$0 sm:$0xff]  ;;  %v2387_v55 = vld [vmem:[#allocation15 + $0x28] sm:$0xff]  ;;  %p3093_p3 = pnand %p3092_p1, %p3359_p5  ;;  %p3098_p8 = por %p3097_p7, %p3096_p12 }
 0x4ec   : > { %2224 = vmatpush.msrb.mxu1 %v2205_v59  ;;  %v2301_v59 = vld [vmem:[#allocation13 + $0x38] sm:$0xff] }
 0x4ed   : > { %2338 = vmatpush.msrb.mxu2 %v2312_v56  ;;  %2361 = vmatpush.msra.mxu3 %v2313_v48  ;;  %v2403_v56 = vld [vmem:[#allocation15 + $0xa8] sm:$0xff]  ;;  %p3094_p4 = pneg %p3093_p3 }
 0x4ee   : > { %2225 = vmatpush.msrb.mxu1 %v2204_v4  ;;  %v2298_v4 = vld [vmem:[#allocation13 + $0x20] sm:$0xff] }
 0x4ef   : > { %2339 = vmatpush.msrb.mxu2 %v2310_v11  ;;  %2362 = vmatpush.msra.mxu3 %v2311_v26  ;;  %p3099_p9 = pnand %p3098_p8, %p3094_p4 }
 0x4f0   : > { %2226 = vmatpush.msrb.mxu1 %v2203_v18  ;;  %v2299_v18 = vld [vmem:[#allocation13 + $0x28] sm:$0xff] }
 0x4f1   : > { %2340 = vmatpush.msrb.mxu2 %v2308_v50 }
 0x4f2   : > { %2227 = vmatpush.msrb.mxu1 %v2202_v57 }
 0x4f3   : > { %2341 = vmatpush.msrb.mxu2 %v2306_v54 }
 0x4f4   : > { %2228 = vmatpush.msrb.mxu1 %v2201_v5 }
 0x4f5   : > { %2342 = vmatpush.msrb.mxu2 %v2304_v63  ;;  %v2401_v63 = vld [vmem:[#allocation15 + $0x98] sm:$0xff] }
 0x4f6   : > { %2229 = vmatpush.msrb.mxu1 %v2200_v17  ;;  %v2296_v17 = vld [vmem:[#allocation13 + $0x10] sm:$0xff] }
 0x4f7   : > { %2343 = vmatpush.msrb.mxu2 %v2302_v62 }
 0x4f8   : > { %2230 = vmatpush.msrb.mxu1 %v2199_v7  ;;  %v2297_v7 = vld [vmem:[#allocation13 + $0x18] sm:$0xff] }
 0x4f9   : > { %2344 = vmatpush.msrb.mxu2 %v2300_v2 }
 0x4fa   : > { %2231 = vmatpush.msrb.mxu1 %v2198_v8 }
 0x4fb   : > { %2345 = vmatpush.msrb.mxu2 %v2298_v4  ;;  %v2400_v4 = vld [vmem:[#allocation15 + $0x90] sm:$0xff] }
 0x4fc   : > { %2232 = vmatpush.msrb.mxu1 %v2197_v9  ;;  %v2294_v9 = vld [vmem:[#allocation13] sm:$0xff] }
 0x4fd   : > { %2346 = vmatpush.msrb.mxu2 %v2296_v17  ;;  %v2398_v17 = vld [vmem:[#allocation15 + $0x80] sm:$0xff] }
 0x4ff   : > { %2347 = vmatpush.msrb.mxu2 %v2294_v9 }
 0x534   : > { %v2176_v13 = vpop.permute.xlu2 %2175 }
 0x53d   : > { %v2186_v22 = vpop.permute.xlu2 %2185 }
 0x54a   : > { %v2184_v23 = vpop.permute.xlu0 %2183 }
 0x54d   : > { %v2168_v0 = vpop.permute.xlu1 %2167 }
 0x54e   : > { %v2189_v15 = vsel %vm1473_vm8, %v2104_v42, %v2168_v0  ;;  %v2397_v0 = vld [vmem:[#allocation15 + $0x78] sm:$0xff] }
 0x54f   : > { %v2192_v10 = vsel %vm2191_vm7, %v2189_v15, %v2176_v13  ;;  %v2413_v13 = vld [vmem:[#allocation15 + $0xf8] sm:$0xff]  ;;  %v2396_v15 = vld [vmem:[#allocation15 + $0x70] sm:$0xff]  ;;  %2418 = vmatpush.msrb.mxu0 %v2397_v0 }
 0x550   : > { %v2195_v16 = vsel %vm2194_vm10, %v2192_v10, %v2184_v23  ;;  %v2295_v23 = vld [vmem:[#allocation13 + $0x8] sm:$0xff]  ;;  %2441 = vmatpush.msra.mxu1 %v2413_v13  ;;  %v2412_v10 = vld [vmem:[#allocation15 + $0xf0] sm:$0xff] }
 0x551   : > { %2233 = vmatmul.f32.vlgmr.msrb.gmra.mxu1 %v2195_v16  ;;  %v2395_v16 = vld [vmem:[#allocation15 + $0x68] sm:$0xff]  ;;  %2419 = vmatpush.msrb.mxu0 %v2396_v15 }
 0x552   : > { %2442 = vmatpush.msra.mxu1 %v2412_v10 }
 0x553   : > { %2420 = vmatpush.msrb.mxu0 %v2395_v16 }
 0x555   : > { %v2178_v35 = vpop.permute.xlu0 %2177 }
 0x556   : > { %v2170_v38 = vpop.permute.xlu1 %2169 }
 0x557   : > { %v2190_v20 = vsel %vm1473_vm8, %v2158_v53, %v2170_v38  ;;  %v2309_v53 = vld [vmem:[#allocation13 + $0x78] sm:$0xff]  ;;  %v2411_v38 = vld [vmem:[#allocation15 + $0xe8] sm:$0xff] }
 0x558   : > { %v2193_v24 = vsel %vm2191_vm7, %v2190_v20, %v2178_v35  ;;  %2363 = vmatpush.msra.mxu3 %v2309_v53  ;;  %2443 = vmatpush.msra.mxu1 %v2411_v38  ;;  %v2386_v53 = vld [vmem:[#allocation15 + $0x20] sm:$0xff] }
 0x559   : > { %v2196_v27 = vsel %vm2194_vm10, %v2193_v24, %v2186_v22  ;;  %v2394_v22 = vld [vmem:[#allocation15 + $0x60] sm:$0xff] }
 0x55a   : > { %2236 = vmatmul.f32.gmra.mxu1 %v2196_v27  ;;  %2364 = vmatpush.msra.mxu3 %v2307_v58  ;;  %v2410_v24 = vld [vmem:[#allocation15 + $0xe0] sm:$0xff]  ;;  %v2385_v58 = vld [vmem:[#allocation15 + $0x18] sm:$0xff] }
 0x55b   : > { %2421 = vmatpush.msrb.mxu0 %v2394_v22  ;;  %2444 = vmatpush.msra.mxu1 %v2410_v24 }
 0x55c   : > { %2365 = vmatpush.msra.mxu3 %v2305_v60 }
 0x55e   : > { %2366 = vmatpush.msra.mxu3 %v2303_v44 }
 0x560   : > { %2367 = vmatpush.msra.mxu3 %v2301_v59  ;;  %v2384_v59 = vld [vmem:[#allocation15 + $0x10] sm:$0xff] }
 0x562   : > { %2368 = vmatpush.msra.mxu3 %v2299_v18  ;;  %v2383_v18 = vld [vmem:[#allocation15 + $0x8] sm:$0xff] }
 0x564   : > { %2369 = vmatpush.msra.mxu3 %v2297_v7 }
 0x566   : > { %2370 = vmatpush.msra.mxu3 %v2295_v23 }
 0x5ce   : > { %v2234_v52 = vpop.f32.mrf.mxu1 }
 0x5cf   : > { %v2235_v29 = vadd.f32 %v2805_v40, %v2234_v52 }
 0x5d1   : > { %v3973_v31 = vadd.f32 %v2851_v51, %v2235_v29  ;;  %v2393_v29 = vld [vmem:[#allocation15 + $0x58] sm:$0xff] }
 0x5d2   : > { %v2409_v51 = vld [vmem:[#allocation15 + $0xd8] sm:$0xff]  ;;  %2422 = vmatpush.msrb.mxu0 %v2393_v29 }
 0x5d3   : > { %2244 = vadd.xlane.f32.xlu1 %v3973_v31  ;;  %2445 = vmatpush.msra.mxu1 %v2409_v51 }
 0x5d7   : > { %v2237_v46 = vpop.f32.mrf.mxu1 }
 0x5d8   : > { %v2238_v12 = vadd.f32 %v2805_v40, %v2237_v46 }
 0x5da   : > { %v3977_v3 = vadd.f32 %v2852_v32, %v2238_v12  ;;  %v2392_v12 = vld [vmem:[#allocation15 + $0x50] sm:$0xff] }
 0x5db   : > { %v2408_v32 = vld [vmem:[#allocation15 + $0xd0] sm:$0xff]  ;;  %2423 = vmatpush.msrb.mxu0 %v2392_v12 }
 0x5dc   : > { %2246 = vadd.xlane.f32.xlu0 %v3977_v3  ;;  %2446 = vmatpush.msra.mxu1 %v2408_v32 }
 0x5dd   : > { %2424 = vmatpush.msrb.mxu0 %v2391_v33 }
 0x5df   : > { %2425 = vmatpush.msrb.mxu0 %v2390_v1 }
 0x646   : > { %v2245_v30 = vpop.xlane.xlu1 %2244 }
 0x647   : > { %v2248_v61 = vmul.f32 %v2245_v30, %v3419_v14  ;;  %v2406_v30 = vld [vmem:[#allocation15 + $0xc0] sm:$0xff] }
 0x649   : > { %v3982_v39 = vsub.f32 %v3973_v31, %v2248_v61 }
 0x64b   : > { %v2252_v6 = vmul.f32 %v3982_v39, %v3982_v39 }
 0x64d   : > { %2254 = vadd.xlane.f32.xlu2 %v2252_v6 }
 0x64f   : > { %v2247_v42 = vpop.xlane.xlu0 %2246 }
 0x650   : > { %v2249_v19 = vmul.f32 %v2247_v42, %v3419_v14  ;;  %v2389_v42 = vld [vmem:[#allocation15 + $0x38] sm:$0xff] }
 0x651   : > { %2426 = vmatpush.msrb.mxu0 %v2389_v42 }
 0x652   : > { %v3988_v37 = vsub.f32 %v3977_v3, %v2249_v19  ;;  %v2405_v19 = vld [vmem:[#allocation15 + $0xb8] sm:$0xff] }
 0x653   : > { %2427 = vmatpush.msrb.mxu0 %v2388_v47 }
 0x654   : > { %v2253_v43 = vmul.f32 %v3988_v37, %v3988_v37 }
 0x655   : > { %2428 = vmatpush.msrb.mxu0 %v2387_v55 }
 0x656   : > { %2256 = vadd.xlane.f32.xlu1 %v2253_v43 }
 0x657   : > { %2429 = vmatpush.msrb.mxu0 %v2386_v53 }
 0x659   : > { %2430 = vmatpush.msrb.mxu0 %v2385_v58 }
 0x65b   : > { %2431 = vmatpush.msrb.mxu0 %v2384_v59 }
 0x65d   : > { %2432 = vmatpush.msrb.mxu0 %v2383_v18 }
 0x6c0   : > { %v2255_v57 = vpop.xlane.xlu2 %2254 }
 0x6c1   : > { %v2258_v5 = vmul.f32 %v2255_v57, %v3419_v14  ;;  %v2399_v57 = vld [vmem:[#allocation15 + $0x88] sm:$0xff] }
 0x6c3   : > { %v2260_v8 = vadd.f32 1e-06, %v2258_v5  ;;  %v2382_v5 = vld [vmem:[#allocation15] sm:$0xff] }
 0x6c4   : > { %2433 = vmatpush.msrb.mxu0 %v2382_v5 }
 0x6c5   : > { %2847 = vrsqrt.f32 %v2260_v8  ;;  %vm2268_vm1 = vweird.f32 %v2260_v8 }
 0x6c9   : > { %v2257_v35 = vpop.xlane.xlu1 %2256 }
 0x6ca   : > { %v2259_v20 = vmul.f32 %v2257_v35, %v3419_v14  ;;  %v2407_v14 = vld [vmem:[#allocation15 + $0xc8] sm:$0xff] }
 0x6cb   : > { %v2848_v27 = vpop.eup %2847  ;;  %2447 = vmatpush.msra.mxu1 %v2407_v14 }
 0x6cc   : > { %v2263_v40 = vmul.f32 %v2848_v27, %v2260_v8  ;;  %v2261_v52 = vadd.f32 1e-06, %v2259_v20  ;;  %vm2269_vm8 = vweird.f32 %v2848_v27 }
 0x6cd   : > { %vm2270_vm2 = vmor %vm2268_vm1, %vm2269_vm8  ;;  %2448 = vmatpush.msra.mxu1 %v2406_v30 }
 0x6ce   : > { %v2264_v46 = vmul.f32 %v2848_v27, %v2263_v40  ;;  %2849 = vrsqrt.f32 %v2261_v52  ;;  %vm2278_vm4 = vweird.f32 %v2261_v52 }
 0x6cf   : > { %2449 = vmatpush.msra.mxu1 %v2405_v19 }
 0x6d0   : > { %v2265_v28 = vmul.f32 0.5, %v2264_v46 }
 0x6d1   : > { %2450 = vmatpush.msra.mxu1 %v2404_v41 }
 0x6d2   : > { %v2266_v21 = vsub.f32 1.5, %v2265_v28 }
 0x6d3   : > { %2451 = vmatpush.msra.mxu1 %v2403_v56 }
 0x6d4   : > { %v2850_v61 = vpop.eup %2849  ;;  %v2267_v6 = vmul.f32 %v2848_v27, %v2266_v21 }
 0x6d5   : > { %v2273_v43 = vmul.f32 %v2850_v61, %v2261_v52  ;;  %vm2279_vm3 = vweird.f32 %v2850_v61 }
 0x6d6   : > { %v2271_v45 = vsel %vm2270_vm2, %v2848_v27, %v2267_v6  ;;  %vm2280_vm5 = vmor %vm2278_vm4, %vm2279_vm3  ;;  %v2808_v27 = vld [vmem:[%s4088_s27] ss:$0 sm:$0xff] }
 0x6d7   : > { %v2282_v49 = vmul.f32 %v2271_v45, %v3982_v39  ;;  %v2274_v25 = vmul.f32 %v2850_v61, %v2273_v43  ;;  %v2402_v39 = vld [vmem:[#allocation15 + $0xa0] sm:$0xff] }
 0x6d8   : > { %2452 = vmatpush.msra.mxu1 %v2402_v39 }
 0x6d9   : > { %v2275_v48 = vmul.f32 0.5, %v2274_v25  ;;  %v2287_v11 = vmul.f32 %v2806_v36, %v2282_v49 }
 0x6da   : > { %2453 = vmatpush.msra.mxu1 %v2401_v63 }
 0x6db   : > { %v2276_v26 = vsub.f32 1.5, %v2275_v48  ;;  %v2292_v50 = vadd.f32 %v2807_v34, %v2287_v11 }
 0x6dc   : > { %2454 = vmatpush.msra.mxu1 %v2400_v4 }
 0x6dd   : > { %v2277_v54 = vmul.f32 %v2850_v61, %v2276_v26  ;;  %2348 = vmatmul.f32.vlgmr.msrb.gmra.mxu2 %v2292_v50  ;;  %2371 = vmatmul.f32.vlgmr.msra.gmra.mxu3 %v2292_v50 }
 0x6de   : > { %2455 = vmatpush.msra.mxu1 %v2399_v57 }
 0x6df   : > { %v2281_v60 = vsel %vm2280_vm5, %v2850_v61, %v2277_v54 }
 0x6e0   : > { %v2283_v62 = vmul.f32 %v2281_v60, %v3988_v37  ;;  %2456 = vmatpush.msra.mxu1 %v2398_v17  ;;  %v2326_v37 = vld [vmem:[%s4087_s3] sm:$0x3] }
 0x6e1   : > { %v2328_v7 = vperm.slane %v2326_v37, 0  ;;  %v2329_v8 = vperm.slane %v2326_v37, 1 }
 0x6e2   : > { %v2288_v44 = vmul.f32 %v2806_v36, %v2283_v62 }
 0x6e4   : > { %v2293_v2 = vadd.f32 %v2807_v34, %v2288_v44 }
 0x6e6   : > { %2351 = vmatmul.f32.gmra.mxu2 %v2293_v2  ;;  %2374 = vmatmul.f32.gmra.mxu3 %v2293_v2 }
 0x760   : > { %v2349_v9 = vpop.f32.mrf.mxu2  ;;  %v2372_v23 = vpop.f32.mrf.mxu3 }
 0x761   : > { %v2350_v0 = vadd.f32 %v2349_v9, %v2328_v7  ;;  %v2373_v13 = vadd.f32 %v2372_v23, %v2329_v8 }
 0x763   : > { %v2378_v15 = vmax.f32 %v2350_v0, 0.0  ;;  %v2379_v10 = vmax.f32 %v2373_v13, 0.0 }
 0x765   : > { %2434 = vmatmul.f32.vlgmr.msrb.gmra.mxu0 %v2378_v15  ;;  %2457 = vmatmul.f32.vlgmr.msra.gmra.mxu1 %v2379_v10 }
 0x769   : > { %v2352_v16 = vpop.f32.mrf.mxu2  ;;  %v2375_v38 = vpop.f32.mrf.mxu3 }
 0x76a   : > { %v2353_v35 = vadd.f32 %v2352_v16, %v2328_v7  ;;  %v2376_v20 = vadd.f32 %v2375_v38, %v2329_v8 }
 0x76c   : > { %v2380_v22 = vmax.f32 %v2353_v35, 0.0  ;;  %v2381_v24 = vmax.f32 %v2376_v20, 0.0 }
 0x76e   : > { %2437 = vmatmul.f32.gmra.mxu0 %v2380_v22  ;;  %2460 = vmatmul.f32.gmra.mxu1 %v2381_v24 }
 0x7e2   : > { %v2435_v40 = vpop.f32.mrf.mxu0  ;;  %v2458_v29 = vpop.f32.mrf.mxu1 }
 0x7e3   : > { %v2436_v52 = vadd.f32 %v2808_v27, %v2435_v40 }
 0x7e5   : > { %v2459_v51 = vadd.f32 %v2458_v29, %v2436_v52 }
 0x7e7   : > { %v2464_v46 = vadd.f32 %v2459_v51, %v3973_v31 }
 0x7e9   : > { %2466 = vst [vmem:[%s564_s22] sm:$0xff] %v2464_v46 }
 0x7eb   : > { %v2438_v12 = vpop.f32.mrf.mxu0  ;;  %v2461_v28 = vpop.f32.mrf.mxu1 }
 0x7ec   : > { %v2439_v32 = vadd.f32 %v2808_v27, %v2438_v12 }
 0x7ee   : > { %v2462_v33 = vadd.f32 %v2461_v28, %v2439_v32 }
 0x7f0   : > { %v2465_v14 = vadd.f32 %v2462_v33, %v3977_v3 }
 0x7f2   : > { %2467 = vst [vmem:[%s564_s22 + $0x8] sm:$0xff] %v2465_v14 }
 0x7f3   : > { %3102 = shalt.err (!%p3099_p9)
}
 0x7f4   : > { %s3176_s16 = smov 128   ;;  %s3177_s21 = smov 8  }
 0x7f5   : > { %2692 = dma.vmem_to_hbm [thread:$0]  (%p3359_p5), %s2482_s2, 256, %s2484_s29, %s2469_s23, %s3176_s16, %s3176_s16, %s3177_s21  }
 0x7f6 PF: > { %s2498_s22 = sand.u32 1, %s3143_s17   ;;  %p4090_p10 = scmp.ge.s32.totalorder %s3155_s0, 2 }
 0x7f7   : > { %s2499_s14 = scalar_lea.sflag [#allocation6], %s2498_s22 }
 0x7f8   : > { %p2718_p13 = pnand %p4090_p10, %p3363_p6 }
 0x7fa   : > { %p2719_p11 = pneg %p2718_p13 }
 0x7fc   : > { %3138 = dma.done.wait (%p2719_p11), %s2499_s14, 256  }
 0x7fd   : > { %3140 = vsyncadd (%p2719_p11), %s2499_s14, 4294967040  ;;  %p38_p0 = scmp.ge.s32.totalorder %s3333_s26, 4   ;;  %s4091_s17 = smov %s3147_s18 }
 0x7fe   : > { %s4092_s18 = smov %s3151_s19  ;;  %s4093_s19 = smov %s3344_s20 }
 0x7ff   : > { %s4094_s0 = smov %s3333_s26  ;;  %40 = sbr.rel (!%p38_p0) target bundleno = 21 (0x15), region = 141 }
 0x804   :  { %2505 = vsyncpa [#allocation5], 1 }
 0x805   :  { %2507 = vsyncpa [#allocation5 + $0x1], 1 }
 0x806   :  { %2508 = vsyncpa [#allocation8], 1 }
 0x807   :  { %2509 = vsyncpa [#allocation11], 1 }
 0x808   :  { %2510 = vsyncpa [#allocation14], 1 }
 0x809   :  { %2511 = vsyncpa [#allocation6], 1 }
 0x80a   :  { %2513 = vsyncpa [#allocation6 + $0x1], 1 }

</bundles_post_ra>
